<compile_context>
chip_gen: v5e
topology: v5e:2x2
jax: 0.10.0
libtpu: 0.0.40
codegen_flags: <defaults>
</compile_context>

<pallas_src>
import numpy as np
import jax
import jax.numpy as jnp
from jax.experimental import pallas as pl
from jax.experimental.pallas import tpu as pltpu


def _round_up(x, m):
    return ((x + m - 1) // m) * m


# ----------------------------------------------------------------------------
# Host-side deterministic parameters: Slaney mel filterbank, periodic Hann
# window, window-folded one-sided real-DFT basis (Nyquist folded into the
# dead Im(X_0) column).
# ----------------------------------------------------------------------------
def _hz_to_mel(f):
    f = np.asarray(f, dtype=np.float64)
    f_sp = 200.0 / 3
    mels = f / f_sp
    min_log_hz = 1000.0
    min_log_mel = min_log_hz / f_sp
    logstep = np.log(6.4) / 27.0
    return np.where(f >= min_log_hz,
                    min_log_mel + np.log(np.maximum(f, 1e-10) / min_log_hz) / logstep,
                    mels)


def _mel_to_hz(m):
    m = np.asarray(m, dtype=np.float64)
    f_sp = 200.0 / 3
    freqs = f_sp * m
    min_log_hz = 1000.0
    min_log_mel = min_log_hz / f_sp
    logstep = np.log(6.4) / 27.0
    return np.where(m >= min_log_mel,
                    min_log_hz * np.exp(logstep * (m - min_log_mel)),
                    freqs)


def mel_filterbank(sr, n_fft, n_mels, fmin, fmax):
    """librosa.filters.mel with htk=False, norm='slaney'."""
    n_freq = n_fft // 2 + 1
    fftfreqs = np.linspace(0.0, sr / 2.0, n_freq)
    mel_pts = np.linspace(_hz_to_mel(fmin), _hz_to_mel(fmax), n_mels + 2)
    mel_f = _mel_to_hz(mel_pts)
    fdiff = np.diff(mel_f)
    ramps = mel_f[:, None] - fftfreqs[None, :]
    weights = np.zeros((n_mels, n_freq), dtype=np.float64)
    for i in range(n_mels):
        lower = -ramps[i] / fdiff[i]
        upper = ramps[i + 2] / fdiff[i + 1]
        weights[i] = np.maximum(0.0, np.minimum(lower, upper))
    enorm = 2.0 / (mel_f[2:n_mels + 2] - mel_f[:n_mels])
    weights *= enorm[:, None]
    return weights.astype(np.float32)                       # (n_mels, n_freq)


def hann_window(win_length):
    # torch.hann_window default: periodic=True
    n = np.arange(win_length, dtype=np.float64)
    return 0.5 * (1.0 - np.cos(2.0 * np.pi * n / win_length))


def fused_dft_matrix(n_fft, win):
    """Window-folded one-sided real DFT, Nyquist folded into the dead column.

    Returns (n_fft, 2h) with h = n_fft//2:
      columns [0, h)    : win * cos(2*pi*n*k/n_fft),  k = 0..h-1
      columns [h, 2h)   : -win * sin(2*pi*n*k/n_fft), k = 0..h-1
    Column h (Im of bin 0) is identically zero, so it is repurposed to hold
    win * (-1)^n, i.e. Re(X_Nyquist).  Im(X_Nyquist) is exactly 0.
    """
    h = n_fft // 2
    n = np.arange(n_fft, dtype=np.float64)[:, None]
    k = np.arange(h, dtype=np.float64)[None, :]
    ang = 2.0 * np.pi * n * k / n_fft
    w = np.asarray(win, dtype=np.float64)[:, None]
    mat = np.concatenate([w * np.cos(ang), w * (-np.sin(ang))], axis=1)
    mat[:, h] = np.asarray(win, dtype=np.float64) * ((-1.0) ** np.arange(n_fft))
    return mat


# ----------------------------------------------------------------------------
# Pallas kernel
# ----------------------------------------------------------------------------
def _mel_kernel(main_ref, ov_ref, w_ref, mel_lo_ref, mel_ny_ref, out_ref):
    # main_ref:   (1, tile_t, hop)      bf16   audio rows for this tile
    # ov_ref:     (1, ov_rows, hop)     bf16   first rows of the next tile
    # w_ref:      (n_fft, 2h)           bf16   window-folded DFT (+Nyquist col)
    # mel_lo_ref: (h, n_mels_pad)       bf16   mel filters, bins 0..h-1
    # mel_ny_ref: (1, n_mels_pad)       f32    mel filter row for the Nyquist bin
    # out_ref:    (1, n_mels_r, tile_t) f32    transposed log-mel tile
    tile_t, hop = main_ref.shape[1], main_ref.shape[2]
    n_fft = w_ref.shape[0]
    h = n_fft // 2
    q = n_fft // hop

    # Overlapping hop-rows for this tile (f32 for cheap sublane-shifted slices).
    rows = jnp.concatenate(
        [main_ref[0].astype(jnp.float32), ov_ref[0].astype(jnp.float32)], axis=0)

    # Windowed one-sided real DFT as q shifted MXU matmuls; frames are never
    # materialized:  Y[t] = sum_j rows[t + j] @ W[j*hop:(j+1)*hop].
    y = None
    for j in range(q):
        xj = rows[j:j + tile_t, :].astype(jnp.bfloat16)            # (tile_t, hop)
        wj = w_ref[j * hop:(j + 1) * hop, :]                       # (hop, 2h) bf16
        yj = jnp.dot(xj, wj, preferred_element_type=jnp.float32)   # (tile_t, 2h)
        y = yj if y is None else y + yj

    re = y[:, :h]
    imz = y[:, h:]                      # lane 0 holds Re(X_Nyquist) (dead Im(X_0))
    re_ny = imz[:, 0:1]                                            # (tile_t, 1)
    lane = jax.lax.broadcasted_iota(jnp.int32, (1, h), 1)
    im = jnp.where(lane == 0, 0.0, imz)                            # zero the reused lane
    mag = jnp.sqrt(re * re + im * im + 1e-9)                       # (tile_t, h)   f32
    mag_ny = jnp.sqrt(re_ny * re_ny + 1e-9)                        # (tile_t, 1)   f32

    # Mel projection (lane-dense, padded to 128) + Nyquist rank-1 update.
    mel = jnp.dot(mag.astype(jnp.bfloat16), mel_lo_ref[...],
                  preferred_element_type=jnp.float32)              # (tile_t, n_mels_pad)
    mel = mel + mag_ny * mel_ny_ref[...]

    # spectral_normalize / dynamic_range_compression: log(clamp(x, 1e-5))
    logmel = jnp.log(jnp.maximum(mel, 1e-5))

    # Lane-dense transposed output: rows = mel bins, lanes = frames.
    out_ref[0] = jnp.transpose(logmel)[:out_ref.shape[1], :]


def mel_spectrogram(audio, *, sr, n_fft, hop_length, win_length, n_mels,
                    f_min, f_max, tile_t=None):
    """audio: (B, L) float32 -> (B, n_mels, n_frames) float32."""
    B, L = audio.shape
    hop = hop_length
    assert n_fft % 2 == 0
    assert win_length <= n_fft
    if n_fft % hop != 0:
        # TODO(synk): gather-based framing fallback for hop not dividing n_fft.
        raise NotImplementedError("in-kernel framing requires hop_length | n_fft")

    h = n_fft // 2
    q = n_fft // hop
    n_mels_pad = _round_up(n_mels, 128)
    n_mels_r = _round_up(n_mels, 8)

    # --- host-side deterministic parameters -------------------------------
    win = hann_window(win_length)
    if win_length < n_fft:  # torch.stft zero-pads the window to n_fft, centered
        lpad = (n_fft - win_length) // 2
        win = np.pad(win, (lpad, n_fft - win_length - lpad))

    w_fused = jnp.asarray(fused_dft_matrix(n_fft, win), dtype=jnp.bfloat16)  # (n_fft, 2h)

    mel_fb = mel_filterbank(sr, n_fft, n_mels, f_min, f_max)                 # (n_mels, h+1)
    melT = np.zeros((h + 1, n_mels_pad), dtype=np.float32)
    melT[:, :n_mels] = mel_fb.T
    mel_lo = jnp.asarray(melT[:h], dtype=jnp.bfloat16)                       # (h, n_mels_pad)
    mel_ny = jnp.asarray(melT[h:h + 1], dtype=jnp.float32)                   # (1, n_mels_pad)

    # --- reflect pad (HiFi-GAN center=False semantics), bf16 HBM stream ----
    pad = (n_fft - hop) // 2
    padded = jnp.pad(audio, ((0, 0), (pad, pad)), mode="reflect").astype(jnp.bfloat16)
    Lp = L + 2 * pad
    n_frames = 1 + (Lp - n_fft) // hop

    # --- tiling ------------------------------------------------------------
    ov_rows = max(16, _round_up(q - 1, 16))
    if tile_t is None:
        tile_t = 512 if n_fft <= 1024 else (256 if n_fft <= 2048 else 128)
    tile_t = min(tile_t, _round_up(n_frames, 128))
    if B == 1 and pl.cdiv(n_frames, tile_t) == 1 and tile_t > 128:
        # keep at least 2 grid steps so both v7x TensorCores get work
        tile_t = max(128, _round_up(pl.cdiv(n_frames, 2), 128))
    tile_t = max(tile_t, ov_rows)
    if tile_t % ov_rows:
        tile_t = _round_up(tile_t, ov_rows)
    num_tiles = pl.cdiv(n_frames, tile_t)
    n_frames_pad = num_tiles * tile_t
    rows_pad = n_frames_pad + ov_rows
    samples_pad = rows_pad * hop

    keep = min(Lp, samples_pad)
    padded = padded[:, :keep]
    padded = jnp.pad(padded, ((0, 0), (0, samples_pad - keep)))
    audio_rows = padded.reshape(B, rows_pad, hop)                            # (B, rows, hop) bf16

    ov_step = tile_t // ov_rows

    out = pl.pallas_call(
        _mel_kernel,
        out_shape=jax.ShapeDtypeStruct((B, n_mels_r, n_frames_pad), jnp.float32),
        grid_spec=pltpu.PrefetchScalarGridSpec(
            num_scalar_prefetch=0,
            grid=(B, num_tiles),
            in_specs=[
                # main audio rows for this tile
                pl.BlockSpec((1, tile_t, hop), lambda b, i: (b, i, 0)),
                # first ov_rows rows of the NEXT tile (overlap; same array)
                pl.BlockSpec((1, ov_rows, hop),
                             lambda b, i: (b, (i + 1) * ov_step, 0)),
                pl.BlockSpec((n_fft, 2 * h), lambda b, i: (0, 0)),     # fused DFT (bf16)
                pl.BlockSpec((h, n_mels_pad), lambda b, i: (0, 0)),    # mel filters (bf16)
                pl.BlockSpec((1, n_mels_pad), lambda b, i: (0, 0)),    # mel Nyquist row
            ],
            out_specs=pl.BlockSpec((1, n_mels_r, tile_t), lambda b, i: (b, 0, i)),
        ),
        compiler_params=pltpu.CompilerParams(
            dimension_semantics=("parallel", "parallel"),
            vmem_limit_bytes=48 * 1024 * 1024),
    )(audio_rows, audio_rows, w_fused, mel_lo, mel_ny)

    return out[:, :n_mels, :n_frames]                                        # (B, n_mels, n_frames)


# ----------------------------------------------------------------------------
# Pure-JAX f32 reference (same math) for a correctness sanity check.
# ----------------------------------------------------------------------------
def _reference(audio, *, sr, n_fft, hop_length, win_length, n_mels, f_min, f_max):
    mel_fb = jnp.asarray(mel_filterbank(sr, n_fft, n_mels, f_min, f_max))
    win = hann_window(win_length)
    if win_length < n_fft:
        lpad = (n_fft - win_length) // 2
        win = np.pad(win, (lpad, n_fft - win_length - lpad))
    win = jnp.asarray(win.astype(np.float32))
    n_freq = n_fft // 2 + 1
    n = np.arange(n_fft, dtype=np.float64)[:, None]
    k = np.arange(n_freq, dtype=np.float64)[None, :]
    ang = 2.0 * np.pi * n * k / n_fft
    cos_m = jnp.asarray(np.cos(ang).astype(np.float32))
    sin_m = jnp.asarray((-np.sin(ang)).astype(np.float32))
    pad = (n_fft - hop_length) // 2
    padded = jnp.pad(audio, ((0, 0), (pad, pad)), mode="reflect")
    Lp = audio.shape[1] + 2 * pad
    n_frames = 1 + (Lp - n_fft) // hop_length
    idx = (np.arange(n_frames)[:, None] * hop_length + np.arange(n_fft)[None, :])
    frames = padded[:, idx] * win[None, None, :]
    re = jnp.einsum("btn,nf->btf", frames, cos_m)
    im = jnp.einsum("btn,nf->btf", frames, sin_m)
    mag = jnp.sqrt(re * re + im * im + 1e-9)                 # (B, n_frames, n_freq)
    mel = jnp.einsum("mf,btf->bmt", mel_fb, mag)             # (B, n_mels, n_frames)
    return jnp.log(jnp.maximum(mel, 1e-5))


if __name__ == "__main__":
    # Small HiFi-GAN-like config (center=False, explicit reflect pad).
    cfg = dict(sr=16000, n_fft=256, hop_length=64, win_length=256,
               n_mels=32, f_min=0.0, f_max=8000.0)

    key = jax.random.PRNGKey(0)
    B, L = 2, 1024
    audio = jax.random.normal(key, (B, L), dtype=jnp.float32)

    out = mel_spectrogram(audio, **cfg)
    out = jax.block_until_ready(out)

    ref = jax.block_until_ready(_reference(audio, **cfg))
    assert out.shape == ref.shape, (out.shape, ref.shape)
    assert jnp.all(jnp.isfinite(out))
    np.testing.assert_allclose(np.asarray(out), np.asarray(ref), atol=5e-2, rtol=5e-2)

    print("KERNEL_OK")
</pallas_src>

<mosaic_0001>
module attributes {stable_mosaic.version = 11 : i64} {
  func.func @_mel_kernel(%arg0: i32, %arg1: i32, %arg2: memref<1x128x64xbf16, #tpu.memory_space<vmem>>, %arg3: memref<1x16x64xbf16, #tpu.memory_space<vmem>>, %arg4: memref<256x256xbf16, #tpu.memory_space<vmem>>, %arg5: memref<128x128xbf16, #tpu.memory_space<vmem>>, %arg6: memref<1x128xf32, #tpu.memory_space<vmem>>, %arg7: memref<1x32x128xf32, #tpu.memory_space<vmem>>) attributes {dimension_semantics = [#tpu.dimension_semantics<parallel>, #tpu.dimension_semantics<parallel>], iteration_bounds = array<i64: 2, 1>, scalar_prefetch = 0 : i64, scratch_operands = 0 : i64, tpu.core_type = #tpu.core_type<tc>, window_params = [{transform_indices = @transform_0, window_bounds = array<i64: 1, 128, 64>}, {transform_indices = @transform_1, window_bounds = array<i64: 1, 16, 64>}, {pipeline_mode = #tpu.pipeline_mode<synchronous>, transform_indices = @transform_2, window_bounds = array<i64: 256, 256>}, {pipeline_mode = #tpu.pipeline_mode<synchronous>, transform_indices = @transform_3, window_bounds = array<i64: 128, 128>}, {pipeline_mode = #tpu.pipeline_mode<synchronous>, transform_indices = @transform_4, window_bounds = array<i64: 1, 128>}, {transform_indices = @transform_5, window_bounds = array<i64: 1, 32, 128>}]} {
    %c0 = arith.constant 0 : index
    %c0_0 = arith.constant 0 : index
    %c0_1 = arith.constant 0 : index
    %0 = vector.load %arg2[%c0, %c0_0, %c0_1] : memref<1x128x64xbf16, #tpu.memory_space<vmem>>, vector<1x128x64xbf16>
    %1 = vector.shape_cast %0 : vector<1x128x64xbf16> to vector<128x64xbf16>
    %2 = arith.extf %1 : vector<128x64xbf16> to vector<128x64xf32>
    %c0_2 = arith.constant 0 : index
    %c0_3 = arith.constant 0 : index
    %c0_4 = arith.constant 0 : index
    %3 = vector.load %arg3[%c0_2, %c0_3, %c0_4] : memref<1x16x64xbf16, #tpu.memory_space<vmem>>, vector<1x16x64xbf16>
    %4 = vector.shape_cast %3 : vector<1x16x64xbf16> to vector<16x64xbf16>
    %5 = arith.extf %4 : vector<16x64xbf16> to vector<16x64xf32>
    %6 = tpu.concatenate %2, %5 in 0 : vector<128x64xf32>, vector<16x64xf32> -> vector<144x64xf32>
    %7 = vector.extract_strided_slice %6 {offsets = [0, 0], sizes = [128, 64], strides = [1, 1]} : vector<144x64xf32> to vector<128x64xf32>
    %8 = arith.truncf %7 : vector<128x64xf32> to vector<128x64xbf16>
    %c0_5 = arith.constant 0 : index
    %c0_6 = arith.constant 0 : index
    %9 = vector.load %arg4[%c0_5, %c0_6] : memref<256x256xbf16, #tpu.memory_space<vmem>>, vector<64x256xbf16>
    %cst = arith.constant dense<0.000000e+00> : vector<128x256xf32>
    %10 = tpu.matmul %8, %9, %cst {dimension_numbers = #tpu.dot_dimension_numbers<[1], [0], [0], [1], [0, 0, 1, 1], [], []>} : vector<128x64xbf16>, vector<64x256xbf16>, vector<128x256xf32> -> vector<128x256xf32>
    %11 = vector.extract_strided_slice %6 {offsets = [1, 0], sizes = [128, 64], strides = [1, 1]} : vector<144x64xf32> to vector<128x64xf32>
    %12 = arith.truncf %11 : vector<128x64xf32> to vector<128x64xbf16>
    %c64 = arith.constant 64 : index
    %c0_7 = arith.constant 0 : index
    %13 = vector.load %arg4[%c64, %c0_7] : memref<256x256xbf16, #tpu.memory_space<vmem>>, vector<64x256xbf16>
    %cst_8 = arith.constant dense<0.000000e+00> : vector<128x256xf32>
    %14 = tpu.matmul %12, %13, %cst_8 {dimension_numbers = #tpu.dot_dimension_numbers<[1], [0], [0], [1], [0, 0, 1, 1], [], []>} : vector<128x64xbf16>, vector<64x256xbf16>, vector<128x256xf32> -> vector<128x256xf32>
    %15 = arith.addf %10, %14 : vector<128x256xf32>
    %16 = vector.extract_strided_slice %6 {offsets = [2, 0], sizes = [128, 64], strides = [1, 1]} : vector<144x64xf32> to vector<128x64xf32>
    %17 = arith.truncf %16 : vector<128x64xf32> to vector<128x64xbf16>
    %c128 = arith.constant 128 : index
    %c0_9 = arith.constant 0 : index
    %18 = vector.load %arg4[%c128, %c0_9] : memref<256x256xbf16, #tpu.memory_space<vmem>>, vector<64x256xbf16>
    %cst_10 = arith.constant dense<0.000000e+00> : vector<128x256xf32>
    %19 = tpu.matmul %17, %18, %cst_10 {dimension_numbers = #tpu.dot_dimension_numbers<[1], [0], [0], [1], [0, 0, 1, 1], [], []>} : vector<128x64xbf16>, vector<64x256xbf16>, vector<128x256xf32> -> vector<128x256xf32>
    %20 = arith.addf %15, %19 : vector<128x256xf32>
    %21 = vector.extract_strided_slice %6 {offsets = [3, 0], sizes = [128, 64], strides = [1, 1]} : vector<144x64xf32> to vector<128x64xf32>
    %22 = arith.truncf %21 : vector<128x64xf32> to vector<128x64xbf16>
    %c192 = arith.constant 192 : index
    %c0_11 = arith.constant 0 : index
    %23 = vector.load %arg4[%c192, %c0_11] : memref<256x256xbf16, #tpu.memory_space<vmem>>, vector<64x256xbf16>
    %cst_12 = arith.constant dense<0.000000e+00> : vector<128x256xf32>
    %24 = tpu.matmul %22, %23, %cst_12 {dimension_numbers = #tpu.dot_dimension_numbers<[1], [0], [0], [1], [0, 0, 1, 1], [], []>} : vector<128x64xbf16>, vector<64x256xbf16>, vector<128x256xf32> -> vector<128x256xf32>
    %25 = arith.addf %20, %24 : vector<128x256xf32>
    %26 = vector.extract_strided_slice %25 {offsets = [0, 0], sizes = [128, 128], strides = [1, 1]} : vector<128x256xf32> to vector<128x128xf32>
    %27 = vector.extract_strided_slice %25 {offsets = [0, 128], sizes = [128, 128], strides = [1, 1]} : vector<128x256xf32> to vector<128x128xf32>
    %28 = vector.extract_strided_slice %27 {offsets = [0, 0], sizes = [128, 1], strides = [1, 1]} : vector<128x128xf32> to vector<128x1xf32>
    %29 = tpu.iota {dimensions = array<i32: 1>} : vector<1x128xi32>
    %c0_i32 = arith.constant 0 : i32
    %30 = vector.broadcast %c0_i32 : i32 to vector<1x128xi32>
    %31 = arith.cmpi eq, %29, %30 : vector<1x128xi32>
    %cst_13 = arith.constant 0.000000e+00 : f32
    %32 = vector.shape_cast %31 : vector<1x128xi1> to vector<1x128xi1>
    %33 = vector.broadcast %32 : vector<1x128xi1> to vector<128x128xi1>
    %34 = vector.broadcast %cst_13 : f32 to vector<128x128xf32>
    %35 = arith.select %33, %34, %27 : vector<128x128xi1>, vector<128x128xf32>
    %36 = arith.mulf %26, %26 : vector<128x128xf32>
    %37 = arith.mulf %35, %35 : vector<128x128xf32>
    %38 = arith.addf %36, %37 : vector<128x128xf32>
    %cst_14 = arith.constant 9.99999971E-10 : f32
    %39 = vector.broadcast %cst_14 : f32 to vector<128x128xf32>
    %40 = arith.addf %38, %39 : vector<128x128xf32>
    %41 = math.sqrt %40 : vector<128x128xf32>
    %42 = arith.mulf %28, %28 : vector<128x1xf32>
    %cst_15 = arith.constant 9.99999971E-10 : f32
    %43 = vector.broadcast %cst_15 : f32 to vector<128x1xf32>
    %44 = arith.addf %42, %43 : vector<128x1xf32>
    %45 = math.sqrt %44 : vector<128x1xf32>
    %46 = arith.truncf %41 : vector<128x128xf32> to vector<128x128xbf16>
    %c0_16 = arith.constant 0 : index
    %c0_17 = arith.constant 0 : index
    %47 = vector.load %arg5[%c0_16, %c0_17] : memref<128x128xbf16, #tpu.memory_space<vmem>>, vector<128x128xbf16>
    %cst_18 = arith.constant dense<0.000000e+00> : vector<128x128xf32>
    %48 = tpu.matmul %46, %47, %cst_18 {dimension_numbers = #tpu.dot_dimension_numbers<[1], [0], [0], [1], [0, 0, 1, 1], [], []>} : vector<128x128xbf16>, vector<128x128xbf16>, vector<128x128xf32> -> vector<128x128xf32>
    %c0_19 = arith.constant 0 : index
    %c0_20 = arith.constant 0 : index
    %49 = vector.load %arg6[%c0_19, %c0_20] : memref<1x128xf32, #tpu.memory_space<vmem>>, vector<1x128xf32>
    %50 = vector.broadcast %45 : vector<128x1xf32> to vector<128x128xf32>
    %51 = vector.broadcast %49 : vector<1x128xf32> to vector<128x128xf32>
    %52 = arith.mulf %50, %51 : vector<128x128xf32>
    %53 = arith.addf %48, %52 : vector<128x128xf32>
    %cst_21 = arith.constant 9.99999974E-6 : f32
    %54 = vector.broadcast %cst_21 : f32 to vector<128x128xf32>
    %55 = arith.maximumf %53, %54 : vector<128x128xf32>
    %56 = math.log %55 : vector<128x128xf32>
    %57 = tpu.transpose %56, [1, 0] : vector<128x128xf32> -> vector<128x128xf32>
    %58 = vector.extract_strided_slice %57 {offsets = [0, 0], sizes = [32, 128], strides = [1, 1]} : vector<128x128xf32> to vector<32x128xf32>
    %c0_22 = arith.constant 0 : index
    %c0_23 = arith.constant 0 : index
    %c0_24 = arith.constant 0 : index
    %59 = vector.load %arg7[%c0_22, %c0_23, %c0_24] : memref<1x32x128xf32, #tpu.memory_space<vmem>>, vector<1x32x128xf32>
    %60 = vector.shape_cast %59 : vector<1x32x128xf32> to vector<32x128xf32>
    %61 = vector.shape_cast %58 : vector<32x128xf32> to vector<1x32x128xf32>
    tpu.vector_store %arg7[%c0_22, %c0_23, %c0_24], %61 {strides = array<i32>} : memref<1x32x128xf32, #tpu.memory_space<vmem>>, vector<1x32x128xf32>,
    return
  }
  func.func @transform_0(%arg0: i32, %arg1: i32) -> (i32, i32, i32) {
    %c0_i32 = arith.constant 0 : i32
    %c0_i32_0 = arith.constant 0 : i32
    return %arg0, %arg1, %c0_i32 : i32, i32, i32
  }
  func.func @transform_1(%arg0: i32, %arg1: i32) -> (i32, i32, i32) {
    %c1_i32 = arith.constant 1 : i32
    %0 = arith.addi %arg1, %c1_i32 : i32
    %c8_i32 = arith.constant 8 : i32
    %1 = arith.muli %0, %c8_i32 : i32
    %c0_i32 = arith.constant 0 : i32
    %c0_i32_0 = arith.constant 0 : i32
    return %arg0, %1, %c0_i32 : i32, i32, i32
  }
  func.func @transform_2(%arg0: i32, %arg1: i32) -> (i32, i32) {
    %c0_i32 = arith.constant 0 : i32
    %c0_i32_0 = arith.constant 0 : i32
    %c0_i32_1 = arith.constant 0 : i32
    return %c0_i32, %c0_i32_0 : i32, i32
  }
  func.func @transform_3(%arg0: i32, %arg1: i32) -> (i32, i32) {
    %c0_i32 = arith.constant 0 : i32
    %c0_i32_0 = arith.constant 0 : i32
    %c0_i32_1 = arith.constant 0 : i32
    return %c0_i32, %c0_i32_0 : i32, i32
  }
  func.func @transform_4(%arg0: i32, %arg1: i32) -> (i32, i32) {
    %c0_i32 = arith.constant 0 : i32
    %c0_i32_0 = arith.constant 0 : i32
    %c0_i32_1 = arith.constant 0 : i32
    return %c0_i32, %c0_i32_0 : i32, i32
  }
  func.func @transform_5(%arg0: i32, %arg1: i32) -> (i32, i32, i32) {
    %c0_i32 = arith.constant 0 : i32
    %c0_i32_0 = arith.constant 0 : i32
    return %arg0, %c0_i32, %arg1 : i32, i32, i32
  }
}

</mosaic_0001>

<bundles_post_ra>
// kernel: tpu_custom_call.1
= control target key start
LH: loop header
LB: loop body
LE: loop exit
PB: predicated region body
PF: predicated region fallthrough
CT: control target
= control target key end

     0   :  { %10 = vsyncpa [#allocation3], 0  ;;  %s4034_s0 = inlined_call_operand.vmem [shape: bf16[2,144,64], index: 0, kind: input, shape index: {}]   ;;  %s4035_s1 = inlined_call_operand.vmem [shape: bf16[2,144,64], index: 1, kind: input, shape index: {}]   ;;  %s4036_s2 = inlined_call_operand.vmem [shape: bf16[256,256], index: 2, kind: input, shape index: {}]   ;;  %s4037_s3 = inlined_call_operand.vmem [shape: bf16[128,128], index: 3, kind: input, shape index: {}]   ;;  %s4038_s4 = inlined_call_operand.vmem [shape: f32[1,128], index: 4, kind: input, shape index: {}]   ;;  %s4039_s5 = inlined_call_operand.hbm [shape: f32[2,32,128], index: 5, kind: output, shape index: {}]  }
   0x1   :  { %12 = vsyncpa [#allocation3 + $0x1], 0  ;;  %s2763_s18 = smov 0   ;;  %s2765_s19 = smov 0  }
   0x2   :  { %s2767_s20 = smov 0   ;;  %s2769_s21 = smov 0  }
   0x3   :  { %s2771_s22 = smov 0   ;;  %s2773_s23 = smov 0  }
   0x4 LB: > { %s2157_s24 = sadd.s32 4294967295, %s2728_s23   ;;  %s2158_s25 = sadd.s32 4294967294, %s2728_s23   ;;  %s2728_s23 = sphi %s2773_s23, %s18_s23   ;;  %s2724_s22 = sphi %s2771_s22, %s4052_s22   ;;  %s2720_s21 = sphi %s2769_s21, %s4051_s21   ;;  %s2716_s20 = sphi %s2767_s20, %s4050_s20   ;;  %s2712_s19 = sphi %s2765_s19, %s4049_s19   ;;  %s2708_s18 = sphi %s2763_s18, %s4048_s18  }
   0x5   : > { %s30_s26 = sadd.s32 1, %s2724_s22  ;;  %s162_s27 = sadd.s32 1, %s2716_s20 }
   0x6   : > { %p32_p0 = scmp.ge.s32.totalorder %s30_s26, 2  ;;  %p172_p1 = scmp.ne.s32.totalorder %s2716_s20, %s2712_s19 }
   0x7   : > { %p173_p2 = scmp.eq.s32.totalorder %s2157_s24, 1  ;;  %p178_p3 = scmp.ne.s32.totalorder %s2712_s19, %s2708_s18 }
   0x8   : > { %s4054_s26 = smov (%p32_p0, %s30_s26), 0  ;;  %p179_p5 = scmp.eq.s32.totalorder %s2158_s25, 1 }
   0x9   : > { %p2803_p4 = por %p173_p2, %p172_p1  ;;  %s157_s29 = ssub.s32 %s2724_s22, %s4054_s26 }
   0xa   : > { %p2161_p6 = scmp.ge.s32.totalorder %s2728_s23, 1  ;;  %p160_p7 = scmp.eq.s32.totalorder %s157_s29, 0 }
   0xb   : > { %p2810_p8 = por %p179_p5, %p178_p3  ;;  %p244_p9 = scmp.lt.s32.totalorder %s2728_s23, 3 }
   0xc   : > { %s2816_s6 = scalar_select %p160_p7, %s2716_s20, %s162_s27  }
   0xd   : > { %p245_p10 = pnand %p2161_p6, %p244_p9 }
   0xf   : > { %248 = sbr.rel (%p245_p10) target bundleno = 713 (0x2c9), region = 40 }
  0x14   : > { %v2223_v0 = vld [vmem:[%s4036_s2 + $0x70] sm:$0xf]  ;;  %v2451_v1 = vld [vmem:[%s4036_s2 + $0x74] sm:$0xf0]  ;;  %v2215_v2 = vld [vmem:[%s4036_s2 + $0x60] sm:$0xf] }
  0x15   : > { %v2224_v3 = vor.u32 %v2451_v1, %v2223_v0  ;;  %v2449_v4 = vld [vmem:[%s4036_s2 + $0x64] sm:$0xf0]  ;;  %p296_p11 = scmp.lt.s32.totalorder %s2720_s21, 1  ;;  %v2207_v6 = vld [vmem:[%s4036_s2 + $0x50] sm:$0xf]  ;;  %vm492_vm0 = vcmask 523264  }
  0x16   : > { %v2216_v5 = vor.u32 %v2449_v4, %v2215_v2  ;;  %v2447_v7 = vld [vmem:[%s4036_s2 + $0x54] sm:$0xf0]  ;;  %v2199_v8 = vld [vmem:[%s4036_s2 + $0x40] sm:$0xf]  ;;  %v2445_v9 = vld [vmem:[%s4036_s2 + $0x44] sm:$0xf0] }
  0x17   : > { %2477 = vmatpush.bf16.msra.mxu1 %v2224_v3  ;;  %2478 = vmatpush.bf16.msra.mxu2 %v2224_v3  ;;  %s297_s29 = scalar_select %p296_p11, %s2720_s21, 1  ;;  %v2847_v10 = vld [vmem:[%s4036_s2 + $0x34] sm:$0xf]  ;;  %v2852_v11 = vld [vmem:[%s4036_s2 + $0x38] sm:$0xf0]  ;;  %v2208_v14 = vor.u32 %v2447_v7, %v2207_v6  ;;  %v2200_v17 = vor.u32 %v2445_v9, %v2199_v8  ;;  %vm786_vm2 = vcmask 1046528  }
  0x18   : > { %2479 = vmatpush.bf16.msra.mxu3 %v2224_v3  ;;  %521 = vmatpush.bf16.msra.mxu0 %v2224_v3  ;;  %v2450_v12 = vld [vmem:[%s4036_s2 + $0x74] sm:$0xf]  ;;  %v2225_v13 = vld [vmem:[%s4036_s2 + $0x78] sm:$0xf0]  ;;  %v2863_v15 = vld [vmem:[%s4036_s2 + $0x30] sm:$0xf]  ;;  %v2276_v24 = vor.u32 %v2847_v10, %v2852_v11 }
  0x19   : > { %s2489_s13 = smul.u32 72, %s297_s29  ;;  %v2868_v16 = vld [vmem:[%s4036_s2 + $0x34] sm:$0xf0]  ;;  %vm383_vm1 = vsmask.f32 7424  ;;  %v2228_v25 = vor.u32 %v2450_v12, %v2225_v13  ;;  %s288_s12 = sand.u32 1, %s2712_s19  }
  0x1a   : > { %v2272_v26 = vor.u32 %v2868_v16, %v2863_v15  ;;  %v2440_v37 = vld [vmem:[%s4036_s2 + $0x24] sm:$0xf]  ;;  %v2217_v43 = vld [vmem:[%s4036_s2 + $0x68] sm:$0xf0]  ;;  %v2263_v53 = vld [vmem:[%s4036_s2 + $0x20] sm:$0xf] }
  0x1b   : > { %2480 = vmatpush.bf16.msra.mxu1 %v2216_v5  ;;  %2481 = vmatpush.bf16.msra.mxu2 %v2216_v5  ;;  %s303_s9 = scalar_lea.vmem %s4034_s0, %s2489_s13  ;;  %s2889_s10 = sadd.s32 64, %s2489_s13  ;;  %v2448_v38 = vld [vmem:[%s4036_s2 + $0x64] sm:$0xf]  ;;  %v2265_v48 = vld [vmem:[%s4036_s2 + $0x28] sm:$0xf0] }
  0x1c   : > { %2482 = vmatpush.bf16.msra.mxu3 %v2216_v5  ;;  %522 = vmatpush.bf16.msra.mxu0 %v2216_v5  ;;  %v2873_v18 = vld [vmem:[%s303_s9 + $0x10] sm:$0xff]  ;;  %v2875_v19 = vld [vmem:[%s303_s9 + $0x18] sm:$0xff]  ;;  %v2877_v20 = vld [vmem:[%s303_s9 + $0x20] sm:$0xff]  ;;  %s319_s25 = scalar_lea.vmem %s4035_s1, %s2889_s10  ;;  %v2220_v56 = vor.u32 %v2448_v38, %v2217_v43  ;;  %v2268_v62 = vor.u32 %v2440_v37, %v2265_v48  ;;  %vm1006_vm3 = vsmask.f32 6400  ;;  %s2162_s13 = sshll.u32 %s288_s12, 5 }
  0x1d   : > { %v2879_v21 = vld [vmem:[%s303_s9 + $0x28] sm:$0xff]  ;;  %v2881_v22 = vld [vmem:[%s303_s9 + $0x30] sm:$0xff]  ;;  %v2883_v23 = vld [vmem:[%s303_s9 + $0x38] sm:$0xff]  ;;  %v400_v27 = vshll.u32 %v2873_v18, 16  ;;  %v404_v28 = vshrl.u32 %v2873_v18, 16  ;;  %v408_v29 = vshll.u32 %v2875_v19, 16 }
  0x1e   : > { %v416_v30 = vshll.u32 %v2877_v20, 16  ;;  %v2895_v31 = vld [vmem:[%s303_s9] sm:$0xff]  ;;  %v2897_v32 = vld [vmem:[%s303_s9 + $0x8] sm:$0xff]  ;;  %v420_v33 = vshrl.u32 %v2877_v20, 16  ;;  %v424_v34 = vshll.u32 %v2879_v21, 16  ;;  %v432_v35 = vshll.u32 %v2881_v22, 16 }
  0x1f   : > { %2483 = vmatpush.bf16.msra.mxu1 %v2208_v14  ;;  %2484 = vmatpush.bf16.msra.mxu2 %v2208_v14  ;;  %v436_v36 = vshrl.u32 %v2881_v22, 16  ;;  %v2911_v39 = vrot.slane %v400_v27, 1  ;;  %v2915_v40 = vrot.slane %v408_v29, 1  ;;  %v440_v42 = vshll.u32 %v2883_v23, 16  ;;  %v2441_v57 = vld [vmem:[%s4036_s2 + $0x24] sm:$0xf0] }
  0x20   : > { %2485 = vmatpush.bf16.msra.mxu3 %v2208_v14  ;;  %523 = vmatpush.bf16.msra.mxu0 %v2208_v14  ;;  %v2919_v41 = vrot.slane %v416_v30, 1  ;;  %v2931_v44 = vrot.slane %v424_v34, 1  ;;  %v2935_v45 = vrot.slane %v432_v35, 1  ;;  %v385_v46 = vshrl.u32 %v2895_v31, 16  ;;  %v356_v58 = vld [vmem:[%s319_s25] sm:$0xf] }
  0x21   : > { %v387_v47 = vshll.u32 %v2895_v31, 16  ;;  %v406_v49 = vor.u32 %v404_v28, %v2911_v39  ;;  %v2950_v51 = vrot.slane %v440_v42, 1  ;;  %v392_v52 = vshll.u32 %v2897_v32, 16  ;;  %v2446_v63 = vld [vmem:[%s4036_s2 + $0x54] sm:$0xf]  ;;  %s290_s14 = scalar_lea.vmem [#allocation2], %s2162_s13 }
  0x22   : > { %v422_v50 = vor.u32 %v420_v33, %v2919_v41  ;;  %v438_v54 = vor.u32 %v436_v36, %v2935_v45  ;;  %v2209_v0 = vld [vmem:[%s4036_s2 + $0x58] sm:$0xf0]  ;;  %v2438_v3 = vld [vmem:[%s4036_s2 + $0x14] sm:$0xf]  ;;  %v2255_v5 = vld [vmem:[%s4036_s2 + $0x10] sm:$0xf]  ;;  %v2264_v6 = vor.u32 %v2441_v57, %v2263_v53  ;;  %v357_v7 = vunpack.c.l.bf16 %v356_v58 }
  0x23   : > { %2486 = vmatpush.bf16.msra.mxu1 %v2200_v17  ;;  %2487 = vmatpush.bf16.msra.mxu2 %v2200_v17  ;;  %v389_v55 = vrot.slane %v387_v47, 1  ;;  %v2966_v59 = vsel %vm383_vm1, %v406_v49, %v2915_v40  ;;  %v2974_v61 = vrot.slane %v392_v52, 1  ;;  %v2257_v4 = vld [vmem:[%s4036_s2 + $0x18] sm:$0xf0]  ;;  %v2439_v8 = vld [vmem:[%s4036_s2 + $0x14] sm:$0xf0]  ;;  %v2212_v14 = vor.u32 %v2446_v63, %v2209_v0 }
  0x24   : > { %2488 = vmatpush.bf16.msra.mxu3 %v2200_v17  ;;  %v2970_v60 = vsel %vm383_vm1, %v422_v50, %v2931_v44  ;;  %524 = vmatpush.bf16.msra.mxu0 %v2200_v17  ;;  %v2988_v1 = vsel %vm383_vm1, %v438_v54, %v2950_v51  ;;  %v2319_v9 = vld [vmem:[%s4036_s2 + $0xb0] sm:$0xf]  ;;  %v2459_v10 = vld [vmem:[%s4036_s2 + $0xb4] sm:$0xf0]  ;;  %v412_v12 = vshrl.u32 %v2875_v19, 16  ;;  %v428_v13 = vshrl.u32 %v2879_v21, 16 }
  0x25   : > { %v390_v2 = vor.u32 %v389_v55, %v385_v46  ;;  %v2436_v15 = vld [vmem:[%s4036_s2 + $0x4] sm:$0xf]  ;;  %v2249_v16 = vld [vmem:[%s4036_s2 + $0x8] sm:$0xf0]  ;;  %v2311_v37 = vld [vmem:[%s4036_s2 + $0xa0] sm:$0xf]  ;;  %v2320_v43 = vor.u32 %v2459_v10, %v2319_v9  ;;  %v2256_v53 = vor.u32 %v2439_v8, %v2255_v5 }
  0x26   : > { %2231 = vmatmul.msk.bf16.vlgmr.msra.gmra.mxu1 %vm492_vm0, %v2966_v59  ;;  %2233 = vmatmul.msk.bf16.vlgmr.msra.gmra.mxu2 %vm492_vm0, %v2970_v60  ;;  %v2444_v17 = vld [vmem:[%s4036_s2 + $0x44] sm:$0xf]  ;;  %v2457_v38 = vld [vmem:[%s4036_s2 + $0xa4] sm:$0xf0]  ;;  %v2247_v48 = vld [vmem:[%s4036_s2] sm:$0xf]  ;;  %v414_v9 = vor.u32 %v412_v12, %v2915_v40  ;;  %v430_v10 = vor.u32 %v428_v13, %v2931_v44 }
  0x27   : > { %570 = vmatpush.bf16.msrb.mxu1 %v2228_v25  ;;  %2235 = vmatmul.msk.bf16.vlgmr.msra.gmra.mxu3 %vm492_vm0, %v2988_v1  ;;  %v3014_v11 = vsel %vm383_vm1, %v390_v2, %v2974_v61  ;;  %v2260_v25 = vor.u32 %v2438_v3, %v2257_v4  ;;  %v2437_v49 = vld [vmem:[%s4036_s2 + $0x4] sm:$0xf0]  ;;  %v2466_v50 = vld [vmem:[%s4036_s2 + $0xf4] sm:$0xf]  ;;  %v2369_v54 = vld [vmem:[%s4036_s2 + $0xf8] sm:$0xf0]  ;;  %v2312_v63 = vor.u32 %v2457_v38, %v2311_v37 }
  0x28   : > { %724 = vmatpush.bf16.msrb.mxu3 %v2276_v24  ;;  %675 = vmatpush.bf16.msrb.mxu2 %v2272_v26  ;;  %v3029_v24 = vpack.c.bf16 %v357_v7, %v357_v7  ;;  %v2201_v26 = vld [vmem:[%s4036_s2 + $0x48] sm:$0xf0]  ;;  %v2458_v55 = vld [vmem:[%s4036_s2 + $0xb4] sm:$0xf]  ;;  %v444_v57 = vshrl.u32 %v2883_v23, 16  ;;  %v2252_v3 = vor.u32 %v2436_v15, %v2249_v16  ;;  %v396_v7 = vshrl.u32 %v2897_v32, 16 }
  0x29   : > { %2229 = vmatmul.msk.bf16.vlgmr.msra.gmra.mxu0 %vm492_vm0, %v3014_v11  ;;  %v2303_v0 = vld [vmem:[%s4036_s2 + $0x90] sm:$0xf]  ;;  %v2455_v2 = vld [vmem:[%s4036_s2 + $0x94] sm:$0xf0]  ;;  %v2372_v8 = vor.u32 %v2466_v50, %v2369_v54  ;;  %v2295_v40 = vld [vmem:[%s4036_s2 + $0x80] sm:$0xf]  ;;  %v3097_v37 = vsel %vm383_vm1, %v430_v10, %v2935_v45 }
  0x2a   : > { %v448_v58 = vshll.u32 %v3029_v24, 16  ;;  %872 = vmatpush.bf16.msrb.mxu0 %v2320_v43  ;;  %v2367_v5 = vld [vmem:[%s4036_s2 + $0xf0] sm:$0xf]  ;;  %v446_v15 = vor.u32 %v444_v57, %v2950_v51  ;;  %v2453_v44 = vld [vmem:[%s4036_s2 + $0x84] sm:$0xf0]  ;;  %v398_v51 = vor.u32 %v396_v7, %v2974_v61  ;;  %v788_v45 = vrot.slane %v2897_v32, 1 }
  0x2b   : > { %571 = vmatpush.bf16.msrb.mxu1 %v2220_v56  ;;  %v2321_v56 = vld [vmem:[%s4036_s2 + $0xb8] sm:$0xf0]  ;;  %v2296_v43 = vor.u32 %v2453_v44, %v2295_v40  ;;  %v2359_v54 = vld [vmem:[%s4036_s2 + $0xe0] sm:$0xf]  ;;  %v2463_v10 = vld [vmem:[%s4036_s2 + $0xd4] sm:$0xf0] }
  0x2c   : > { %725 = vmatpush.bf16.msrb.mxu3 %v2268_v62  ;;  %676 = vmatpush.bf16.msrb.mxu2 %v2264_v6  ;;  %v2204_v62 = vor.u32 %v2444_v17, %v2201_v26  ;;  %v2324_v4 = vor.u32 %v2458_v55, %v2321_v56  ;;  %v2467_v6 = vld [vmem:[%s4036_s2 + $0xf4] sm:$0xf0]  ;;  %v450_v16 = vrot.slane %v448_v58, 1  ;;  %v2304_v17 = vor.u32 %v2455_v2, %v2303_v0  ;;  %v2465_v55 = vld [vmem:[%s4036_s2 + $0xe4] sm:$0xf0]  ;;  %s2476_s15 = sshll.u32 %s2720_s21, 5 }
  0x2d   : > { %v419_v26 = vsel %vm383_vm1, %v414_v9, %v2919_v41  ;;  %v403_v61 = vsel %vm383_vm1, %v398_v51, %v2911_v39  ;;  %v787_v41 = vrot.slane %v2895_v31, 1  ;;  %v2464_v39 = vld [vmem:[%s4036_s2 + $0xe4] sm:$0xf]  ;;  %v792_v2 = vrot.slane %v2875_v19, 1  ;;  %v2351_v9 = vld [vmem:[%s4036_s2 + $0xd0] sm:$0xf]  ;;  %s2057_s24 = scalar_lea.hbm %s4039_s5, %s2476_s15 }
  0x2e   : > { %873 = vmatpush.bf16.msrb.mxu0 %v2312_v63  ;;  %v3100_v38 = vsel %vm383_vm1, %v446_v15, %v450_v16  ;;  %v790_v63 = vrot.slane %v2873_v18, 1  ;;  %v2352_v15 = vor.u32 %v2463_v10, %v2351_v9  ;;  %v794_v16 = vrot.slane %v2877_v20, 1  ;;  %v2460_v44 = vld [vmem:[%s4036_s2 + $0xc4] sm:$0xf]  ;;  %v2345_v51 = vld [vmem:[%s4036_s2 + $0xc8] sm:$0xf0] }
  0x2f   : > { %572 = vmatpush.bf16.msrb.mxu1 %v2212_v14  ;;  %v2248_v14 = vor.u32 %v2437_v49, %v2247_v48  ;;  %v3117_v48 = vsel %vm786_vm2, %v787_v41, %v788_v45  ;;  %v2361_v49 = vld [vmem:[%s4036_s2 + $0xe8] sm:$0xf0]  ;;  %v2343_v41 = vld [vmem:[%s4036_s2 + $0xc0] sm:$0xf]  ;;  %s2058_s25 = sshll.u32 %s290_s14, 4  ;;  %s2060_s27 = sshll.u32 %s2057_s24, 4  ;;  %s2059_s25 = int_to_ptr.vmem [resolvable:$true] %s2058_s25  ;;  %s2061_s27 = int_to_ptr.hbm [resolvable:$true] %s2060_s27 }
  0x30   : > { %726 = vmatpush.bf16.msrb.mxu3 %v2260_v25  ;;  %677 = vmatpush.bf16.msrb.mxu2 %v2256_v53  ;;  %v2368_v25 = vor.u32 %v2467_v6, %v2367_v5  ;;  %v2364_v50 = vor.u32 %v2464_v39, %v2361_v49  ;;  %v2313_v53 = vld [vmem:[%s4036_s2 + $0xa8] sm:$0xf0]  ;;  %v3146_v0 = vsel %vm786_vm2, %v788_v45, %v790_v63  ;;  %v2353_v5 = vld [vmem:[%s4036_s2 + $0xd8] sm:$0xf0]  ;;  %v2461_v45 = vld [vmem:[%s4036_s2 + $0xc4] sm:$0xf0] }
  0x31   : > { %v2344_v39 = vor.u32 %v2461_v45, %v2343_v41  ;;  %v798_v49 = vrot.slane %v2881_v22, 1  ;;  %s2045_s7 = scalar_lea.sflag [#allocation3], %s288_s12  ;;  %s2664_s29 = sshra.s32 %s2061_s27, 4  ;;  %s2665_s29 = int_to_ptr.hbm [resolvable:$true] %s2664_s29 }
  0x32   : > { %874 = vmatpush.bf16.msrb.mxu0 %v2304_v17  ;;  %v3187_v17 = vsel %vm786_vm2, %v792_v2, %v794_v16  ;;  %s2666_s8 = scalar_lea.hbm %s2665_s29, 32  ;;  %s2670_s10 = scalar_lea.hbm %s4039_s5, 64 }
  0x33   : > { %573 = vmatpush.bf16.msrb.mxu1 %v2204_v62  ;;  %v2360_v62 = vor.u32 %v2465_v55, %v2359_v54  ;;  %v800_v54 = vrot.slane %v2883_v23, 1  ;;  %v1008_v55 = vrot.slane %v387_v47, 2  ;;  %p2667_p12 = scmp.ne.s32.totalorder %s2665_s29, %s2666_s8  ;;  %p2671_p1 = scmp.lt.s32.totalorder %s2665_s29, %s4039_s5 }
  0x34   : > { %727 = vmatpush.bf16.msrb.mxu3 %v2252_v3  ;;  %678 = vmatpush.bf16.msrb.mxu2 %v2248_v14  ;;  %v3158_v3 = vsel %vm786_vm2, %v790_v63, %v792_v2  ;;  %v802_v2 = vrot.slane %v3029_v24, 1  ;;  %p2672_p2 = scmp.lt.s32.totalorder %s2670_s10, %s2666_s8 }
  0x35   : > { %p2668_p13 = pnand %p2667_p12, %p2803_p4 }
  0x36   : > { %2232 = vmatmul.msk.bf16.gmra.mxu1 %vm492_vm0, %v419_v26  ;;  %2234 = vmatmul.msk.bf16.gmra.mxu2 %vm492_vm0, %v3097_v37  ;;  %p2673_p3 = por %p2672_p2, %p2671_p1 }
  0x37   : > { %921 = vmatpush.bf16.msra.mxu1 %v2324_v4  ;;  %2236 = vmatmul.msk.bf16.gmra.mxu3 %vm492_vm0, %v3100_v38  ;;  %v2462_v4 = vld [vmem:[%s4036_s2 + $0xd4] sm:$0xf]  ;;  %p2669_p0 = pneg %p2668_p13 }
  0x38   : > { %1161 = vmatpush.bf16.msra.mxu3 %v2372_v8  ;;  %1112 = vmatpush.bf16.msra.mxu2 %v2368_v25  ;;  %v2356_v6 = vor.u32 %v2462_v4, %v2353_v5  ;;  %v2305_v8 = vld [vmem:[%s4036_s2 + $0x98] sm:$0xf0]  ;;  %v796_v25 = vrot.slane %v2879_v21, 1  ;;  %v3276_v5 = vsel %vm786_vm2, %v800_v54, %v802_v2 }
  0x39   : > { %875 = vmatpush.bf16.msrb.mxu0 %v2296_v43  ;;  %v2297_v43 = vld [vmem:[%s4036_s2 + $0x88] sm:$0xf0]  ;;  %p2674_p5 = pnand %p2673_p3, %p2669_p0 }
  0x3a   : > { %2230 = vmatmul.msk.bf16.gmra.mxu0 %vm492_vm0, %v403_v61  ;;  %v3199_v40 = vsel %vm786_vm2, %v794_v16, %v796_v25 }
  0x3c   : > { %1162 = vmatpush.bf16.msra.mxu3 %v2364_v50  ;;  %1113 = vmatpush.bf16.msra.mxu2 %v2360_v62  ;;  %v1007_v50 = vrot.slane %v385_v46, 1  ;;  %v3251_v46 = vsel %vm786_vm2, %v798_v49, %v800_v54 }
  0x3e   : > { %v1009_v62 = vor.u32 %v1008_v55, %v1007_v50 }
  0x40   : > { %1163 = vmatpush.bf16.msra.mxu3 %v2356_v6  ;;  %1114 = vmatpush.bf16.msra.mxu2 %v2352_v15 }
  0x44   : > { %1115 = vmatpush.bf16.msra.mxu2 %v2344_v39 }
  0x46   : > { %2237 = vmatmul.msk.bf16.vlgmr.msrb.gmra.mxu1 %vm492_vm0, %v3014_v11  ;;  %2277 = vmatmul.msk.bf16.vlgmr.msrb.gmra.mxu2 %vm492_vm0, %v2895_v31  ;;  %v2456_v11 = vld [vmem:[%s4036_s2 + $0xa4] sm:$0xf] }
  0x47   : > { %2285 = vmatmul.msk.bf16.vlgmr.msrb.gmra.mxu3 %vm492_vm0, %v2895_v31  ;;  %v2316_v56 = vor.u32 %v2456_v11, %v2313_v53  ;;  %v3229_v11 = vsel %vm786_vm2, %v796_v25, %v798_v49  ;;  %v1011_v53 = vrot.slane %v392_v52, 2 }
  0x49   : > { %922 = vmatpush.bf16.msra.mxu1 %v2316_v56 }
  0x4a   : > { %2325 = vmatmul.msk.bf16.vlgmr.msrb.gmra.mxu0 %vm492_vm0, %v3117_v48 }
  0x56   : > { %2238 = vmatmul.msk.bf16.gmra.mxu1 %vm492_vm0, %v403_v61  ;;  %2278 = vmatmul.msk.bf16.gmra.mxu2 %vm492_vm0, %v2897_v32 }
  0x57   : > { %2286 = vmatmul.msk.bf16.gmra.mxu3 %vm492_vm0, %v2897_v32 }
  0x5a   : > { %2326 = vmatmul.msk.bf16.gmra.mxu0 %vm492_vm0, %v3146_v0 }
  0x66   : > { %2239 = vmatmul.msk.bf16.gmra.mxu1 %vm492_vm0, %v2966_v59  ;;  %2279 = vmatmul.msk.bf16.gmra.mxu2 %vm492_vm0, %v2873_v18  ;;  %v2454_v59 = vld [vmem:[%s4036_s2 + $0x94] sm:$0xf] }
  0x67   : > { %2287 = vmatmul.msk.bf16.gmra.mxu3 %vm492_vm0, %v2873_v18  ;;  %v2308_v14 = vor.u32 %v2454_v59, %v2305_v8  ;;  %v2475_v18 = vld [vmem:[%s4037_s3 + $0x38] sm:$0xff] }
  0x68   : > { %1911 = vmatpush.bf16.msra.mxu0 %v2475_v18 }
  0x69   : > { %923 = vmatpush.bf16.msra.mxu1 %v2308_v14 }
  0x6a   : > { %2327 = vmatmul.msk.bf16.gmra.mxu0 %vm492_vm0, %v3158_v3 }
  0x76   : > { %2240 = vmatmul.msk.bf16.gmra.mxu1 %vm492_vm0, %v419_v26  ;;  %2280 = vmatmul.msk.bf16.gmra.mxu2 %vm492_vm0, %v2875_v19  ;;  %v2348_v26 = vor.u32 %v2460_v44, %v2345_v51  ;;  %v1014_v51 = vrot.slane %v404_v28, 1 }
  0x77   : > { %2288 = vmatmul.msk.bf16.gmra.mxu3 %vm492_vm0, %v2875_v19  ;;  %v2474_v19 = vld [vmem:[%s4037_s3 + $0x30] sm:$0xff] }
  0x78   : > { %1164 = vmatpush.bf16.msra.mxu3 %v2348_v26  ;;  %v1015_v26 = vrot.slane %v400_v27, 2  ;;  %1912 = vmatpush.bf16.msra.mxu0 %v2474_v19 }
  0x7a   : > { %2328 = vmatmul.msk.bf16.gmra.mxu0 %vm492_vm0, %v3187_v17 }
  0x86   : > { %2241 = vmatmul.msk.bf16.gmra.mxu1 %vm492_vm0, %v2970_v60  ;;  %2281 = vmatmul.msk.bf16.gmra.mxu2 %vm492_vm0, %v2877_v20  ;;  %v2452_v60 = vld [vmem:[%s4036_s2 + $0x84] sm:$0xf] }
  0x87   : > { %2289 = vmatmul.msk.bf16.gmra.mxu3 %vm492_vm0, %v2877_v20  ;;  %v2300_v61 = vor.u32 %v2452_v60, %v2297_v43  ;;  %v1016_v60 = vor.u32 %v1015_v26, %v1014_v51  ;;  %v1023_v26 = vrot.slane %v416_v30, 2  ;;  %v2473_v20 = vld [vmem:[%s4037_s3 + $0x28] sm:$0xff] }
  0x88   : > { %1913 = vmatpush.bf16.msra.mxu0 %v2473_v20 }
  0x89   : > { %924 = vmatpush.bf16.msra.mxu1 %v2300_v61 }
  0x8a   : > { %2329 = vmatmul.msk.bf16.gmra.mxu0 %vm492_vm0, %v3199_v40 }
  0x96   : > { %2242 = vmatmul.msk.bf16.gmra.mxu1 %vm492_vm0, %v3097_v37  ;;  %2282 = vmatmul.msk.bf16.gmra.mxu2 %vm492_vm0, %v2879_v21  ;;  %v1010_v37 = vrot.slane %v396_v7, 1 }
  0x97   : > { %2290 = vmatmul.msk.bf16.gmra.mxu3 %vm492_vm0, %v2879_v21  ;;  %v2472_v21 = vld [vmem:[%s4037_s3 + $0x20] sm:$0xff] }
  0x98   : > { %v1012_v63 = vor.u32 %v1011_v53, %v1010_v37  ;;  %v1019_v37 = vrot.slane %v408_v29, 2  ;;  %1914 = vmatpush.bf16.msra.mxu0 %v2472_v21 }
  0x9a   : > { %2330 = vmatmul.msk.bf16.gmra.mxu0 %vm492_vm0, %v3229_v11  ;;  %v1013_v32 = vsel %vm1006_vm3, %v1009_v62, %v1012_v63  ;;  %v1017_v39 = vsel %vm1006_vm3, %v1012_v63, %v1016_v60 }
  0xa3   : > { %v3244_v56 = vpop.f32.mrf.mxu1 }
  0xa6   : > { %2243 = vmatmul.msk.bf16.gmra.mxu1 %vm492_vm0, %v2988_v1  ;;  %2283 = vmatmul.msk.bf16.gmra.mxu2 %vm492_vm0, %v2881_v22  ;;  %v3292_v14 = vpop.f32.mrf.mxu0 }
  0xa7   : > { %2291 = vmatmul.msk.bf16.gmra.mxu3 %vm492_vm0, %v2881_v22  ;;  %v2471_v22 = vld [vmem:[%s4037_s3 + $0x18] sm:$0xff] }
  0xa8   : > { %1915 = vmatpush.bf16.msra.mxu0 %v2471_v22 }
  0xa9   : > { %v3256_v31 = vpop.f32.mrf.mxu2 }
  0xaa   : > { %2331 = vmatmul.msk.bf16.gmra.mxu0 %vm492_vm0, %v3251_v46  ;;  %v3260_v47 = vpop.f32.mrf.mxu3 }
  0xab   : > { %v3262_v52 = vpop.f32.mrf.mxu1 }
  0xae   : > { %v3306_v43 = vpop.f32.mrf.mxu0 }
  0xb1   : > { %v3264_v1 = vpop.f32.mrf.mxu2 }
  0xb2   : > { %v3266_v7 = vpop.f32.mrf.mxu3 }
  0xb3   : > { %v3269_v4 = vpop.f32.mrf.mxu1 }
  0xb6   : > { %2244 = vmatmul.msk.bf16.gmra.mxu1 %vm492_vm0, %v3100_v38  ;;  %2284 = vmatmul.msk.bf16.gmra.mxu2 %vm492_vm0, %v2883_v23 }
  0xb7   : > { %2292 = vmatmul.msk.bf16.gmra.mxu3 %vm492_vm0, %v2883_v23  ;;  %v3322_v28 = vpop.f32.mrf.mxu0  ;;  %v1038_v23 = vshrl.u32 %v3029_v24, 16 }
  0xb9   : > { %v3280_v59 = vpop.f32.mrf.mxu2 }
  0xba   : > { %2332 = vmatmul.msk.bf16.gmra.mxu0 %vm492_vm0, %v3276_v5  ;;  %v3284_v6 = vpop.f32.mrf.mxu3 }
  0xbb   : > { %v3286_v8 = vpop.f32.mrf.mxu1 }
  0xc1   : > { %v3288_v9 = vpop.f32.mrf.mxu2 }
  0xc2   : > { %v3290_v38 = vpop.f32.mrf.mxu3 }
  0xc3   : > { %v575_v10 = vpop.f32.mrf.mxu1 }
  0xc6   : > { %2333 = vmatmul.msk.bf16.vlgmr.msra.gmra.mxu1 %vm492_vm0, %v3117_v48  ;;  %2373 = vmatmul.msk.bf16.vlgmr.msra.gmra.mxu2 %vm492_vm0, %v1013_v32 }
  0xc7   : > { %2381 = vmatmul.msk.bf16.vlgmr.msra.gmra.mxu3 %vm492_vm0, %v1013_v32 }
  0xc9   : > { %v3298_v15 = vpop.f32.mrf.mxu2 }
  0xca   : > { %v729_v16 = vpop.f32.mrf.mxu3 }
  0xcb   : > { %v3300_v25 = vadd.f32 %v729_v16, %v575_v10  ;;  %v577_v44 = vpop.f32.mrf.mxu1  ;;  %v3335_v10 = vpop.f32.mrf.mxu0 }
  0xd1   : > { %v3308_v48 = vpop.f32.mrf.mxu2 }
  0xd2   : > { %v731_v61 = vpop.f32.mrf.mxu3 }
  0xd3   : > { %v3310_v41 = vadd.f32 %v731_v61, %v577_v44  ;;  %v580_v45 = vpop.f32.mrf.mxu1 }
  0xd6   : > { %2334 = vmatmul.msk.bf16.gmra.mxu1 %vm492_vm0, %v3146_v0  ;;  %2374 = vmatmul.msk.bf16.gmra.mxu2 %vm492_vm0, %v1017_v39  ;;  %v1018_v0 = vrot.slane %v412_v12, 1 }
  0xd7   : > { %2382 = vmatmul.msk.bf16.gmra.mxu3 %vm492_vm0, %v1017_v39 }
  0xd8   : > { %v1020_v54 = vor.u32 %v1019_v37, %v1018_v0 }
  0xd9   : > { %v3320_v27 = vpop.f32.mrf.mxu2 }
  0xda   : > { %v734_v49 = vpop.f32.mrf.mxu3  ;;  %v1021_v2 = vsel %vm1006_vm3, %v1016_v60, %v1020_v54  ;;  %v3353_v60 = vpop.f32.mrf.mxu0 }
  0xdb   : > { %v3324_v50 = vadd.f32 %v734_v49, %v580_v45  ;;  %v582_v53 = vpop.f32.mrf.mxu1 }
  0xe1   : > { %v3330_v55 = vpop.f32.mrf.mxu2 }
  0xe2   : > { %v736_v62 = vpop.f32.mrf.mxu3  ;;  %v3368_v30 = vpop.f32.mrf.mxu0 }
  0xe3   : > { %v3332_v63 = vadd.f32 %v736_v62, %v582_v53  ;;  %v585_v32 = vpop.f32.mrf.mxu1  ;;  %v1027_v62 = vrot.slane %v424_v34, 2 }
  0xe6   : > { %2335 = vmatmul.msk.bf16.gmra.mxu1 %vm492_vm0, %v3158_v3  ;;  %2375 = vmatmul.msk.bf16.gmra.mxu2 %vm492_vm0, %v1021_v2  ;;  %v1022_v3 = vrot.slane %v420_v33, 1 }
  0xe7   : > { %2383 = vmatmul.msk.bf16.gmra.mxu3 %vm492_vm0, %v1021_v2 }
  0xe8   : > { %v1024_v61 = vor.u32 %v1023_v26, %v1022_v3 }
  0xe9   : > { %v690_v29 = vpop.f32.mrf.mxu2 }
  0xea   : > { %v3345_v12 = vadd.f32 %v690_v29, %v3244_v56  ;;  %v739_v16 = vpop.f32.mrf.mxu3  ;;  %v1025_v53 = vsel %vm1006_vm3, %v1020_v54, %v1024_v61  ;;  %v3379_v19 = vpop.f32.mrf.mxu0 }
  0xeb   : > { %v3347_v44 = vadd.f32 %v739_v16, %v585_v32  ;;  %v587_v51 = vpop.f32.mrf.mxu1 }
  0xf1   : > { %v692_v45 = vpop.f32.mrf.mxu2 }
  0xf2   : > { %v3356_v39 = vadd.f32 %v692_v45, %v3262_v52  ;;  %v741_v18 = vpop.f32.mrf.mxu3  ;;  %v3402_v45 = vpop.f32.mrf.mxu0 }
  0xf3   : > { %v3358_v56 = vadd.f32 %v741_v18, %v587_v51  ;;  %v590_v49 = vpop.f32.mrf.mxu1 }
  0xf6   : > { %2336 = vmatmul.msk.bf16.gmra.mxu1 %vm492_vm0, %v3187_v17  ;;  %2376 = vmatmul.msk.bf16.gmra.mxu2 %vm492_vm0, %v1025_v53  ;;  %v1026_v17 = vrot.slane %v428_v13, 1 }
  0xf7   : > { %2384 = vmatmul.msk.bf16.gmra.mxu3 %vm492_vm0, %v1025_v53 }
  0xf8   : > { %v1028_v32 = vor.u32 %v1027_v62, %v1026_v17 }
  0xf9   : > { %v695_v33 = vpop.f32.mrf.mxu2 }
  0xfa   : > { %v3371_v52 = vadd.f32 %v695_v33, %v3269_v4  ;;  %v744_v0 = vpop.f32.mrf.mxu3  ;;  %v1029_v3 = vsel %vm1006_vm3, %v1024_v61, %v1028_v32  ;;  %v1030_v61 = vrot.slane %v436_v36, 1 }
  0xfb   : > { %v3373_v37 = vadd.f32 %v744_v0, %v590_v49  ;;  %v592_v54 = vpop.f32.mrf.mxu1 }
 0x101   : > { %v697_v2 = vpop.f32.mrf.mxu2 }
 0x102   : > { %v3382_v29 = vadd.f32 %v697_v2, %v3286_v8  ;;  %v746_v16 = vpop.f32.mrf.mxu3 }
 0x103   : > { %v3384_v4 = vadd.f32 %v746_v16, %v592_v54  ;;  %v595_v51 = vpop.f32.mrf.mxu1  ;;  %v3409_v54 = vpop.f32.mrf.mxu0 }
 0x106   : > { %2337 = vmatmul.msk.bf16.gmra.mxu1 %vm492_vm0, %v3199_v40  ;;  %2377 = vmatmul.msk.bf16.gmra.mxu2 %vm492_vm0, %v1029_v3  ;;  %v1031_v40 = vrot.slane %v432_v35, 2 }
 0x107   : > { %2385 = vmatmul.msk.bf16.gmra.mxu3 %vm492_vm0, %v1029_v3 }
 0x108   : > { %v1032_v18 = vor.u32 %v1031_v40, %v1030_v61  ;;  %v2470_v61 = vld [vmem:[%s4037_s3 + $0x10] sm:$0xff] }
 0x109   : > { %v3394_v34 = vpop.f32.mrf.mxu2  ;;  %1916 = vmatpush.bf16.msra.mxu0 %v2470_v61  ;;  %v2469_v61 = vld [vmem:[%s4037_s3 + $0x8] sm:$0xff] }
 0x10a   : > { %v749_v13 = vpop.f32.mrf.mxu3  ;;  %v1033_v0 = vsel %vm1006_vm3, %v1028_v32, %v1032_v18  ;;  %v1034_v32 = vrot.slane %v444_v57, 1 }
 0x10b   : > { %v3396_v8 = vadd.f32 %v749_v13, %v595_v51  ;;  %v597_v26 = vpop.f32.mrf.mxu1  ;;  %v3426_v16 = vpop.f32.mrf.mxu0 }
 0x10d   : > { %1917 = vmatpush.bf16.msra.mxu0 %v2469_v61 }
 0x111   : > { %v3404_v49 = vpop.f32.mrf.mxu2 }
 0x112   : > { %v751_v53 = vpop.f32.mrf.mxu3 }
 0x113   : > { %v3406_v20 = vadd.f32 %v751_v53, %v597_v26  ;;  %v600_v33 = vpop.f32.mrf.mxu1  ;;  %v3443_v57 = vpop.f32.mrf.mxu0 }
 0x116   : > { %2338 = vmatmul.msk.bf16.gmra.mxu1 %vm492_vm0, %v3229_v11  ;;  %2378 = vmatmul.msk.bf16.gmra.mxu2 %vm492_vm0, %v1033_v0  ;;  %v1035_v11 = vrot.slane %v440_v42, 2 }
 0x117   : > { %2386 = vmatmul.msk.bf16.gmra.mxu3 %vm492_vm0, %v1033_v0  ;;  %v1041_v0 = vrot.slane %v448_v58, 2 }
 0x118   : > { %v1036_v2 = vor.u32 %v1035_v11, %v1034_v32 }
 0x119   : > { %v3418_v35 = vpop.f32.mrf.mxu2 }
 0x11a   : > { %v754_v36 = vpop.f32.mrf.mxu3  ;;  %v1037_v26 = vsel %vm1006_vm3, %v1032_v18, %v1036_v2 }
 0x11b   : > { %v3420_v17 = vadd.f32 %v754_v36, %v600_v33  ;;  %v602_v62 = vpop.f32.mrf.mxu1  ;;  %v1040_v33 = vrot.slane %v1038_v23, 1 }
 0x121   : > { %v3428_v51 = vpop.f32.mrf.mxu2 }
 0x122   : > { %v756_v3 = vpop.f32.mrf.mxu3 }
 0x123   : > { %v3430_v21 = vadd.f32 %v756_v3, %v602_v62  ;;  %v605_v13 = vpop.f32.mrf.mxu1  ;;  %v3454_v3 = vpop.f32.mrf.mxu0 }
 0x126   : > { %2339 = vmatmul.msk.bf16.gmra.mxu1 %vm492_vm0, %v3251_v46  ;;  %2379 = vmatmul.msk.bf16.gmra.mxu2 %vm492_vm0, %v1037_v26  ;;  %v1042_v46 = vor.u32 %v1041_v0, %v1040_v33  ;;  %v681_v0 = vadd.f32 %v3298_v15, %v3292_v14  ;;  %v2468_v14 = vld [vmem:[%s4037_s3] sm:$0xff] }
 0x127   : > { %2387 = vmatmul.msk.bf16.gmra.mxu3 %vm492_vm0, %v1037_v26  ;;  %1918 = vmatpush.bf16.msra.mxu0 %v2468_v14 }
 0x128   : > { %v1043_v11 = vsel %vm1006_vm3, %v1036_v2, %v1042_v46  ;;  %v2730_v46 = vmov 0  }
 0x129   : > { %v3441_v42 = vpop.f32.mrf.mxu2  ;;  %2550 = vset.pattern.permute.xlu0 %v2730_v46  ;;  %2551 = vset.pattern.permute.xlu1 %v2730_v46 }
 0x12a   : > { %v759_v40 = vpop.f32.mrf.mxu3  ;;  %2552 = vset.pattern.permute.xlu2 %v2730_v46 }
 0x12b   : > { %v3445_v18 = vadd.f32 %v759_v40, %v605_v13  ;;  %v607_v53 = vpop.f32.mrf.mxu1  ;;  %v3467_v2 = vpop.f32.mrf.mxu0  ;;  %v1238_v40 = vlaneseq }
 0x131   : > { %v3449_v22 = vpop.f32.mrf.mxu2 }
 0x132   : > { %v761_v36 = vpop.f32.mrf.mxu3 }
 0x133   : > { %v3451_v62 = vadd.f32 %v761_v36, %v607_v53  ;;  %v610_v32 = vpop.f32.mrf.mxu1  ;;  %v3475_v36 = vand.u32 127, %v1238_v40  ;;  %v683_v40 = vadd.f32 %v3308_v48, %v3306_v43 }
 0x135   : > { %4042 = vst [vmem:[#allocation5_spill] sm:$0xff] %v3451_v62  ;;  %vm1240_vm4 = vcmp.eq.s32.totalorder %v3475_v36, 0 }
 0x136   : > { %2340 = vmatmul.msk.bf16.gmra.mxu1 %vm492_vm0, %v3276_v5  ;;  %2380 = vmatmul.msk.bf16.gmra.mxu2 %vm492_vm0, %v1043_v11 }
 0x137   : > { %2388 = vmatmul.msk.bf16.gmra.mxu3 %vm492_vm0, %v1043_v11  ;;  %v3478_v11 = vpop.f32.mrf.mxu0 }
 0x139   : > { %v3460_v24 = vpop.f32.mrf.mxu2 }
 0x13a   : > { %v764_v58 = vpop.f32.mrf.mxu3 }
 0x13b   : > { %v3462_v13 = vadd.f32 %v764_v58, %v610_v32  ;;  %v612_v26 = vpop.f32.mrf.mxu1  ;;  %v966_v32 = vadd.f32 %v3353_v60, %v681_v0 }
 0x13d   : > { %4043 = vst [vmem:[#allocation6_spill] sm:$0xff] %v3462_v13 }
 0x141   : > { %v3469_v23 = vpop.f32.mrf.mxu2 }
 0x142   : > { %v766_v5 = vpop.f32.mrf.mxu3 }
 0x143   : > { %v3471_v53 = vadd.f32 %v766_v5, %v612_v26  ;;  %v926_v33 = vpop.f32.mrf.mxu1 }
 0x144   : > { %v967_v58 = vadd.f32 %v926_v33, %v3300_v25 }
 0x145   : > { %4044 = vst [vmem:[#allocation7_spill] sm:$0xff] %v3471_v53 }
 0x149   : > { %v1117_v61 = vpop.f32.mrf.mxu2 }
 0x14a   : > { %v1206_v13 = vadd.f32 %v1117_v61, %v966_v32  ;;  %v1166_v26 = vpop.f32.mrf.mxu3  ;;  %v968_v32 = vadd.f32 %v3368_v30, %v683_v40 }
 0x14b   : > { %v1207_v15 = vadd.f32 %v1166_v26, %v967_v58  ;;  %v928_v5 = vpop.f32.mrf.mxu1  ;;  %v902_v58 = vpop.f32.mrf.mxu0 }
 0x14c   : > { %v1259_v46 = vmul.f32 %v1206_v13, %v1206_v13  ;;  %v969_v53 = vadd.f32 %v928_v5, %v3310_v41  ;;  %v686_v13 = vadd.f32 %v3320_v27, %v3322_v28  ;;  %v3509_v28 = vadd.f32 %v3409_v54, %v3345_v12 }
 0x14d   : > { %v1243_v60 = vsel %vm1240_vm4, 0.0, %v1207_v15  ;;  %v1515_v25 = vmul.f32 %v1207_v15, %v1207_v15  ;;  %v703_v12 = vadd.f32 %v3404_v49, %v3264_v1 }
 0x14e   : > { %v1275_v33 = vmul.f32 %v1243_v60, %v1243_v60  ;;  %v688_v60 = vadd.f32 %v3330_v55, %v3335_v10 }
 0x14f   : > { %v3489_v0 = vadd.f32 1e-09, %v1515_v25 }
 0x150   : > { %v1291_v61 = vadd.f32 %v1275_v33, %v1259_v46  ;;  %v972_v27 = vadd.f32 %v3402_v45, %v688_v60  ;;  %v701_v33 = vadd.f32 %v3394_v34, %v3256_v31  ;;  %v708_v31 = vadd.f32 %v3428_v51, %v3288_v9 }
 0x151   : > { %v1119_v62 = vpop.f32.mrf.mxu2  ;;  %2554 = vrsqrt.f32 %v3489_v0  ;;  %vm1554_vm5 = vcmp.eq.f32.partialorder %v3489_v0, inf  ;;  %vm1556_vm6 = vcmp.eq.f32.partialorder %v3489_v0, 0.0 }
 0x152   : > { %v3494_v26 = vadd.f32 1e-09, %v1291_v61  ;;  %v1208_v43 = vadd.f32 %v1119_v62, %v968_v32  ;;  %v1168_v48 = vpop.f32.mrf.mxu3  ;;  %v970_v62 = vadd.f32 %v3379_v19, %v686_v13  ;;  %v3531_v13 = vadd.f32 %v3443_v57, %v3371_v52 }
 0x153   : > { %v1209_v14 = vadd.f32 %v1168_v48, %v969_v53  ;;  %v931_v15 = vpop.f32.mrf.mxu1  ;;  %v3514_v53 = vadd.f32 %v3426_v16, %v3356_v39  ;;  %v706_v39 = vadd.f32 %v3418_v35, %v3280_v59  ;;  %v904_v1 = vpop.f32.mrf.mxu0  ;;  %v3541_v51 = vadd.f32 %v3467_v2, %v701_v33 }
 0x154   : > { %2556 = vrsqrt.f32 %v3494_v26  ;;  %v1260_v30 = vmul.f32 %v1208_v43, %v1208_v43  ;;  %v971_v19 = vadd.f32 %v931_v15, %v3324_v50  ;;  %v3536_v15 = vadd.f32 %v3454_v3, %v3382_v29 }
 0x155   : > { %v1244_v41 = vsel %vm1240_vm4, 0.0, %v1209_v14  ;;  %v1516_v5 = vmul.f32 %v1209_v14, %v1209_v14  ;;  %v3544_v52 = vadd.f32 %v3478_v11, %v703_v12  ;;  %vm1330_vm7 = vcmp.eq.f32.partialorder %v3494_v26, inf }
 0x156   : > { %v1276_v40 = vmul.f32 %v1244_v41, %v1244_v41  ;;  %v3546_v41 = vadd.f32 %v902_v58, %v706_v39  ;;  %vm1332_vm8 = vcmp.eq.f32.partialorder %v3494_v26, 0.0 }
 0x157   : > { %v2555_v46 = vpop.eup %2554  ;;  %v3504_v25 = vadd.f32 1e-09, %v1516_v5  ;;  %v3548_v5 = vadd.f32 %v904_v1, %v708_v31 }
 0x158   : > { %v1292_v55 = vadd.f32 %v1276_v40, %v1260_v30  ;;  %v1548_v10 = vmul.f32 %v2555_v46, %v3489_v0  ;;  %v3554_v40 = vadd.f32 %v3441_v42, %v3260_v47 }
 0x159   : > { %v1122_v32 = vpop.f32.mrf.mxu2  ;;  %2558 = vrsqrt.f32 %v3504_v25  ;;  %vm1566_vm9 = vcmp.eq.f32.partialorder %v3504_v25, inf  ;;  %vm1568_vm10 = vcmp.eq.f32.partialorder %v3504_v25, 0.0 }
 0x15a   : > { %v2557_v45 = vpop.eup %2556  ;;  %v3522_v54 = vadd.f32 1e-09, %v1292_v55  ;;  %v1210_v61 = vadd.f32 %v1122_v32, %v970_v62  ;;  %v1171_v43 = vpop.f32.mrf.mxu3  ;;  %v1549_v48 = vmul.f32 %v2555_v46, %v1548_v10 }
 0x15b   : > { %v1211_v34 = vadd.f32 %v1171_v43, %v971_v19  ;;  %v933_v50 = vpop.f32.mrf.mxu1  ;;  %v1324_v16 = vmul.f32 %v2557_v45, %v3494_v26 }
 0x15c   : > { %2560 = vrsqrt.f32 %v3522_v54  ;;  %v1261_v49 = vmul.f32 %v1210_v61, %v1210_v61  ;;  %v1550_v14 = vmul.f32 0.5, %v1549_v48  ;;  %v973_v11 = vadd.f32 %v933_v50, %v3332_v63 }
 0x15d   : > { %v1245_v59 = vsel %vm1240_vm4, 0.0, %v1211_v34  ;;  %v1517_v9 = vmul.f32 %v1211_v34, %v1211_v34  ;;  %v1325_v35 = vmul.f32 %v2557_v45, %v1324_v16  ;;  %v1557_v63 = vand.u32 2147483648, %v3489_v0 }
 0x15e   : > { %v1277_v57 = vmul.f32 %v1245_v59, %v1245_v59  ;;  %v1551_v60 = vsub.f32 1.5, %v1550_v14  ;;  %vm1342_vm11 = vcmp.eq.f32.partialorder %v3522_v54, inf  ;;  %vm1344_vm12 = vcmp.eq.f32.partialorder %v3522_v54, 0.0 }
 0x15f   : > { %v2559_v30 = vpop.eup %2558  ;;  %v3550_v29 = vadd.f32 1e-09, %v1517_v9  ;;  %v1326_v3 = vmul.f32 0.5, %v1325_v35 }
 0x160   : > { %v1293_v62 = vadd.f32 %v1277_v57, %v1261_v49  ;;  %v1552_v2 = vmul.f32 %v2555_v46, %v1551_v60  ;;  %v1560_v55 = vmul.f32 %v2559_v30, %v3504_v25 }
 0x161   : > { %v1124_v10 = vpop.f32.mrf.mxu2  ;;  %v1327_v58 = vsub.f32 1.5, %v1326_v3  ;;  %2562 = vrsqrt.f32 %v3550_v29  ;;  %vm1578_vm13 = vcmp.eq.f32.partialorder %v3550_v29, inf  ;;  %vm1580_vm14 = vcmp.eq.f32.partialorder %v3550_v29, 0.0 }
 0x162   : > { %v2561_v33 = vpop.eup %2560  ;;  %v3560_v19 = vadd.f32 1e-09, %v1293_v62  ;;  %v1212_v32 = vadd.f32 %v1124_v10, %v972_v27  ;;  %v1173_v12 = vpop.f32.mrf.mxu3  ;;  %v1553_v47 = vmul.f32 %v1552_v2, %v3489_v0  ;;  %v1561_v42 = vmul.f32 %v2559_v30, %v1560_v55 }
 0x163   : > { %v1213_v61 = vadd.f32 %v1173_v12, %v973_v11  ;;  %v936_v46 = vpop.f32.mrf.mxu1  ;;  %v1336_v43 = vmul.f32 %v2561_v33, %v3522_v54  ;;  %v1328_v34 = vmul.f32 %v2557_v45, %v1327_v58  ;;  %v1569_v2 = vand.u32 2147483648, %v3504_v25 }
 0x164   : > { %v1262_v48 = vmul.f32 %v1212_v32, %v1212_v32  ;;  %v1555_v39 = vsel %vm1554_vm5, %v3489_v0, %v1553_v47  ;;  %v1562_v31 = vmul.f32 0.5, %v1561_v42  ;;  %2564 = vrsqrt.f32 %v3560_v19 }
 0x165   : > { %v1246_v27 = vsel %vm1240_vm4, 0.0, %v1213_v61  ;;  %v1518_v50 = vmul.f32 %v1213_v61, %v1213_v61  ;;  %v1558_v16 = vsel %vm1556_vm6, %v1557_v63, %v1555_v39  ;;  %v1337_v14 = vmul.f32 %v2561_v33, %v1336_v43 }
 0x166   : > { %v1278_v1 = vmul.f32 %v1246_v27, %v1246_v27  ;;  %1766 = vperm.xlu0 %2550, %v1558_v16   ;;  %v1563_v49 = vsub.f32 1.5, %v1562_v31  ;;  %v1333_v0 = vand.u32 2147483648, %v3494_v26  ;;  %v1329_v57 = vmul.f32 %v1328_v34, %v3494_v26 }
 0x167   : > { %v2563_v59 = vpop.eup %2562  ;;  %v3572_v9 = vadd.f32 1e-09, %v1518_v50  ;;  %v1338_v60 = vmul.f32 0.5, %v1337_v14  ;;  %v975_v3 = vadd.f32 %v936_v46, %v3347_v44  ;;  %vm1354_vm15 = vcmp.eq.f32.partialorder %v3560_v19, inf }
 0x168   : > { %v1294_v45 = vadd.f32 %v1278_v1, %v1262_v48  ;;  %v1564_v35 = vmul.f32 %v2559_v30, %v1563_v49  ;;  %v1572_v55 = vmul.f32 %v2563_v59, %v3550_v29  ;;  %v1345_v49 = vand.u32 2147483648, %v3522_v54 }
 0x169   : > { %v1127_v62 = vpop.f32.mrf.mxu2  ;;  %2566 = vrsqrt.f32 %v3572_v9  ;;  %v1339_v30 = vsub.f32 1.5, %v1338_v60  ;;  %vm1590_vm0 = vcmp.eq.f32.partialorder %v3572_v9, inf  ;;  %vm1592_vm1 = vcmp.eq.f32.partialorder %v3572_v9, 0.0 }
 0x16a   : > { %v3582_v11 = vadd.f32 1e-09, %v1294_v45  ;;  %v1214_v10 = vadd.f32 %v1127_v62, %v3509_v28  ;;  %v1176_v58 = vpop.f32.mrf.mxu3  ;;  %v1565_v32 = vmul.f32 %v1564_v35, %v3504_v25  ;;  %v1573_v44 = vmul.f32 %v2563_v59, %v1572_v55  ;;  %v2565_v42 = vpop.eup %2564 }
 0x16b   : > { %v1215_v12 = vadd.f32 %v1176_v58, %v975_v3  ;;  %v938_v47 = vpop.f32.mrf.mxu1  ;;  %v1331_v28 = vsel %vm1330_vm7, %v3494_v26, %v1329_v57  ;;  %v1340_v63 = vmul.f32 %v2561_v33, %v1339_v30  ;;  %v1348_v50 = vmul.f32 %v2565_v42, %v3560_v19 }
 0x16c   : > { %v1263_v61 = vmul.f32 %v1214_v10, %v1214_v10  ;;  %v1567_v46 = vsel %vm1566_vm9, %v3504_v25, %v1565_v32  ;;  %v1574_v31 = vmul.f32 0.5, %v1573_v44  ;;  %2568 = vrsqrt.f32 %v3582_v11 }
 0x16d   : > { %v1247_v43 = vsel %vm1240_vm4, 0.0, %v1215_v12  ;;  %v1519_v48 = vmul.f32 %v1215_v12, %v1215_v12  ;;  %v1570_v39 = vsel %vm1568_vm10, %v1569_v2, %v1567_v46  ;;  %v1341_v27 = vmul.f32 %v1340_v63, %v3522_v54 }
 0x16e   : > { %v1279_v34 = vmul.f32 %v1247_v43, %v1247_v43  ;;  %1771 = vperm.xlu0 %2550, %v1570_v39   ;;  %v1334_v33 = vsel %vm1332_vm8, %v1333_v0, %v1331_v28  ;;  %v1575_v14 = vsub.f32 1.5, %v1574_v31  ;;  %v1349_v57 = vmul.f32 %v2565_v42, %v1348_v50 }
 0x16f   : > { %v2567_v16 = vpop.eup %2566  ;;  %v3601_v1 = vadd.f32 1e-09, %v1519_v48  ;;  %v1343_v45 = vsel %vm1342_vm11, %v3522_v54, %v1341_v27  ;;  %v977_v60 = vadd.f32 %v938_v47, %v3358_v56  ;;  %v907_v54 = vpop.f32.mrf.mxu0  ;;  %vm1356_vm2 = vcmp.eq.f32.partialorder %v3560_v19, 0.0 }
 0x170   : > { %v1295_v25 = vadd.f32 %v1279_v34, %v1263_v61  ;;  %v1584_v35 = vmul.f32 %v2567_v16, %v3572_v9  ;;  %v1346_v62 = vsel %vm1344_vm12, %v1345_v49, %v1343_v45  ;;  %v1576_v2 = vmul.f32 %v2563_v59, %v1575_v14 }
 0x171   : > { %v1129_v3 = vpop.f32.mrf.mxu2  ;;  %2570 = vrsqrt.f32 %v3601_v1  ;;  %v1739_v55 = vpack.c.bf16 %v1346_v62, %v1334_v33  ;;  %v1350_v12 = vmul.f32 0.5, %v1349_v57  ;;  %v3628_v27 = vadd.f32 %v907_v54, %v3554_v40 }
 0x172   : > { %v1216_v26 = vadd.f32 %v1129_v3, %v3514_v53  ;;  %v1178_v0 = vpop.f32.mrf.mxu3  ;;  %v1585_v10 = vmul.f32 %v2567_v16, %v1584_v35  ;;  %v3616_v58 = vadd.f32 1e-09, %v1295_v25  ;;  %v1577_v56 = vmul.f32 %v1576_v2, %v3550_v29  ;;  %v2569_v47 = vpop.eup %2568 }
 0x173   : > { %v1217_v32 = vadd.f32 %v1178_v0, %v977_v60  ;;  %v941_v30 = vpop.f32.mrf.mxu1  ;;  %1919 = vmatmul.bf16.vlgmr.msra.gmra.mxu0 %v1739_v55  ;;  %v1581_v53 = vand.u32 2147483648, %v3550_v29  ;;  %v1351_v63 = vsub.f32 1.5, %v1350_v12  ;;  %v1360_v31 = vmul.f32 %v2569_v47, %v3582_v11 }
 0x174   : > { %v1264_v44 = vmul.f32 %v1216_v26, %v1216_v26  ;;  %v1586_v59 = vmul.f32 0.5, %v1585_v10  ;;  %v1579_v28 = vsel %vm1578_vm13, %v3550_v29, %v1577_v56  ;;  %2572 = vrsqrt.f32 %v3616_v58 }
 0x175   : > { %v1248_v61 = vsel %vm1240_vm4, 0.0, %v1217_v32  ;;  %v1520_v46 = vmul.f32 %v1217_v32, %v1217_v32  ;;  %v1582_v48 = vsel %vm1580_vm14, %v1581_v53, %v1579_v28  ;;  %v1352_v33 = vmul.f32 %v2565_v42, %v1351_v63 }
 0x176   : > { %v1280_v43 = vmul.f32 %v1248_v61, %v1248_v61  ;;  %v1587_v39 = vsub.f32 1.5, %v1586_v59  ;;  %1776 = vperm.xlu1 %2551, %v1582_v48   ;;  %v1361_v29 = vmul.f32 %v2569_v47, %v1360_v31  ;;  %v979_v45 = vadd.f32 %v941_v30, %v3373_v37 }
 0x177   : > { %v2571_v34 = vpop.eup %2570  ;;  %v3630_v50 = vadd.f32 1e-09, %v1520_v46  ;;  %v1357_v37 = vand.u32 2147483648, %v3560_v19  ;;  %vm1366_vm3 = vcmp.eq.f32.partialorder %v3582_v11, inf  ;;  %vm1368_vm5 = vcmp.eq.f32.partialorder %v3582_v11, 0.0 }
 0x178   : > { %v1296_v49 = vadd.f32 %v1280_v43, %v1264_v44  ;;  %v1588_v14 = vmul.f32 %v2567_v16, %v1587_v39  ;;  %v1596_v25 = vmul.f32 %v2571_v34, %v3601_v1  ;;  %v1593_v16 = vand.u32 2147483648, %v3572_v9 }
 0x179   : > { %v1132_v35 = vpop.f32.mrf.mxu2  ;;  %2574 = vrsqrt.f32 %v3630_v50  ;;  %v1362_v60 = vmul.f32 0.5, %v1361_v29  ;;  %v1369_v46 = vand.u32 2147483648, %v3582_v11  ;;  %vm1602_vm6 = vcmp.eq.f32.partialorder %v3601_v1, inf }
 0x17a   : > { %v1218_v40 = vadd.f32 %v1132_v35, %v3531_v13  ;;  %v1181_v42 = vpop.f32.mrf.mxu3  ;;  %v1589_v57 = vmul.f32 %v1588_v14, %v3572_v9  ;;  %v1597_v2 = vmul.f32 %v2571_v34, %v1596_v25  ;;  %v1353_v13 = vmul.f32 %v1352_v33, %v3560_v19  ;;  %v2573_v55 = vpop.eup %2572 }
 0x17b   : > { %v1219_v3 = vadd.f32 %v1181_v42, %v979_v45  ;;  %v943_v62 = vpop.f32.mrf.mxu1  ;;  %v3648_v10 = vadd.f32 1e-09, %v1296_v49  ;;  %v1363_v56 = vsub.f32 1.5, %v1362_v60  ;;  %v1372_v53 = vmul.f32 %v2573_v55, %v3616_v58 }
 0x17c   : > { %v1265_v26 = vmul.f32 %v1218_v40, %v1218_v40  ;;  %v1591_v0 = vsel %vm1590_vm0, %v3572_v9, %v1589_v57  ;;  %v1598_v44 = vmul.f32 0.5, %v1597_v2  ;;  %vm1604_vm7 = vcmp.eq.f32.partialorder %v3601_v1, 0.0 }
 0x17d   : > { %v1249_v32 = vsel %vm1240_vm4, 0.0, %v1219_v3  ;;  %v1594_v30 = vsel %vm1592_vm1, %v1593_v16, %v1591_v0  ;;  %v1521_v54 = vmul.f32 %v1219_v3, %v1219_v3  ;;  %v1364_v61 = vmul.f32 %v2569_v47, %v1363_v56 }
 0x17e   : > { %v1281_v12 = vmul.f32 %v1249_v32, %v1249_v32  ;;  %1781 = vperm.xlu1 %2551, %v1594_v30   ;;  %v1599_v63 = vsub.f32 1.5, %v1598_v44  ;;  %v1373_v43 = vmul.f32 %v2573_v55, %v1372_v53  ;;  %v981_v48 = vadd.f32 %v943_v62, %v3384_v4 }
 0x17f   : > { %v2575_v59 = vpop.eup %2574  ;;  %v1355_v31 = vsel %vm1354_vm15, %v3560_v19, %v1353_v13  ;;  %v1365_v47 = vmul.f32 %v1364_v61, %v3582_v11  ;;  %2576 = vrsqrt.f32 %v3648_v10  ;;  %v3665_v33 = vadd.f32 1e-09, %v1521_v54 }
 0x180   : > { %v1297_v28 = vadd.f32 %v1281_v12, %v1265_v26  ;;  %v1608_v9 = vmul.f32 %v2575_v59, %v3630_v50  ;;  %v1600_v29 = vmul.f32 %v2571_v34, %v1599_v63  ;;  %v1605_v40 = vand.u32 2147483648, %v3601_v1 }
 0x181   : > { %v1134_v39 = vpop.f32.mrf.mxu2  ;;  %v1367_v4 = vsel %vm1366_vm3, %v3582_v11, %v1365_v47  ;;  %v1374_v42 = vmul.f32 0.5, %v1373_v43  ;;  %v1358_v16 = vsel %vm1356_vm2, %v1357_v37, %v1355_v31  ;;  %2578 = vrsqrt.f32 %v3665_v33 }
 0x182   : > { %v1220_v49 = vadd.f32 %v1134_v39, %v3536_v15  ;;  %v1183_v14 = vpop.f32.mrf.mxu3  ;;  %v1609_v25 = vmul.f32 %v2575_v59, %v1608_v9  ;;  %v1370_v60 = vsel %vm1368_vm5, %v1369_v46, %v1367_v4  ;;  %v1601_v15 = vmul.f32 %v1600_v29, %v3601_v1 }
 0x183   : > { %v1221_v45 = vadd.f32 %v1183_v14, %v981_v48  ;;  %v946_v35 = vpop.f32.mrf.mxu1  ;;  %v1740_v62 = vpack.c.bf16 %v1370_v60, %v1358_v16  ;;  %v1375_v13 = vsub.f32 1.5, %v1374_v42  ;;  %v3685_v11 = vadd.f32 %v3449_v22, %v3266_v7 }
 0x184   : > { %v1266_v57 = vmul.f32 %v1220_v49, %v1220_v49  ;;  %v1610_v2 = vmul.f32 0.5, %v1609_v25  ;;  %v1603_v0 = vsel %vm1602_vm6, %v3601_v1, %v1601_v15  ;;  %vm1614_vm8 = vcmp.eq.f32.partialorder %v3630_v50, inf }
 0x185   : > { %v1250_v34 = vsel %vm1240_vm4, 0.0, %v1221_v45  ;;  %v1522_v3 = vmul.f32 %v1221_v45, %v1221_v45  ;;  %v2577_v19 = vpop.eup %2576  ;;  %1924 = vmatmul.bf16.gmra.mxu0 %v1740_v62  ;;  %v1606_v32 = vsel %vm1604_vm7, %v1605_v40, %v1603_v0  ;;  %vm1616_vm9 = vcmp.eq.f32.partialorder %v3630_v50, 0.0 }
 0x186   : > { %v1282_v26 = vmul.f32 %v1250_v34, %v1250_v34  ;;  %v1611_v30 = vsub.f32 1.5, %v1610_v2  ;;  %1786 = vperm.xlu2 %2552, %v1606_v32   ;;  %v1384_v12 = vmul.f32 %v2577_v19, %v3648_v10  ;;  %v983_v54 = vadd.f32 %v946_v35, %v3396_v8 }
 0x187   : > { %v3687_v37 = vadd.f32 1e-09, %v1522_v3  ;;  %v1376_v22 = vmul.f32 %v2573_v55, %v1375_v13  ;;  %v1617_v61 = vand.u32 2147483648, %v3630_v50  ;;  %vm1378_vm10 = vcmp.eq.f32.partialorder %v3616_v58, inf  ;;  %v2579_v55 = vpop.eup %2578 }
 0x188   : > { %v1298_v56 = vadd.f32 %v1282_v26, %v1266_v57  ;;  %v1612_v7 = vmul.f32 %v2575_v59, %v1611_v30  ;;  %v1385_v46 = vmul.f32 %v2577_v19, %v1384_v12  ;;  %v3699_v63 = vadd.f32 1e-09, %v1297_v28 }
 0x189   : > { %v1137_v44 = vpop.f32.mrf.mxu2  ;;  %2580 = vrsqrt.f32 %v3687_v37  ;;  %vm1380_vm11 = vcmp.eq.f32.partialorder %v3616_v58, 0.0  ;;  %v1381_v8 = vand.u32 2147483648, %v3616_v58  ;;  %vm1390_vm12 = vcmp.eq.f32.partialorder %v3648_v10, inf }
 0x18a   : > { %v1222_v53 = vadd.f32 %v1137_v44, %v3541_v51  ;;  %v1186_v1 = vpop.f32.mrf.mxu3  ;;  %v1613_v48 = vmul.f32 %v1612_v7, %v3630_v50  ;;  %v3704_v59 = vadd.f32 1e-09, %v1298_v56  ;;  %v1386_v39 = vmul.f32 0.5, %v1385_v46 }
 0x18b   : > { %v1223_v9 = vadd.f32 %v1186_v1, %v983_v54  ;;  %v948_v43 = vpop.f32.mrf.mxu1  ;;  %v1377_v49 = vmul.f32 %v1376_v22, %v3616_v58  ;;  %v1620_v45 = vmul.f32 %v2579_v55, %v3665_v33  ;;  %vm1392_vm13 = vcmp.eq.f32.partialorder %v3648_v10, 0.0 }
 0x18c   : > { %v1267_v51 = vmul.f32 %v1222_v53, %v1222_v53  ;;  %v1615_v47 = vsel %vm1614_vm8, %v3630_v50, %v1613_v48  ;;  %v1387_v25 = vsub.f32 1.5, %v1386_v39  ;;  %v1393_v40 = vand.u32 2147483648, %v3648_v10 }
 0x18d   : > { %v1251_v31 = vsel %vm1240_vm4, 0.0, %v1223_v9  ;;  %v1523_v28 = vmul.f32 %v1223_v9, %v1223_v9  ;;  %v1618_v29 = vsel %vm1616_vm9, %v1617_v61, %v1615_v47  ;;  %2582 = vrsqrt.f32 %v3699_v63 }
 0x18e   : > { %v1283_v14 = vmul.f32 %v1251_v31, %v1251_v31  ;;  %1791 = vperm.xlu2 %2552, %v1618_v29   ;;  %v1388_v57 = vmul.f32 %v2577_v19, %v1387_v25  ;;  %v1621_v16 = vmul.f32 %v2579_v55, %v1620_v45  ;;  %v985_v60 = vadd.f32 %v948_v43, %v3406_v20 }
 0x18f   : > { %v2581_v4 = vpop.eup %2580  ;;  %v3716_v35 = vadd.f32 1e-09, %v1523_v28  ;;  %v1379_v34 = vsel %vm1378_vm10, %v3616_v58, %v1377_v49  ;;  %vm1626_vm14 = vcmp.eq.f32.partialorder %v3665_v33, inf  ;;  %2584 = vrsqrt.f32 %v3704_v59 }
 0x190   : > { %v3721_v42 = vadd.f32 %v1283_v14, %v1267_v51  ;;  %v1632_v50 = vmul.f32 %v2581_v4, %v3687_v37  ;;  %v1389_v2 = vmul.f32 %v1388_v57, %v3648_v10  ;;  %v1622_v26 = vmul.f32 0.5, %v1621_v16 }
 0x191   : > { %v1139_v15 = vpop.f32.mrf.mxu2  ;;  %vm1628_vm15 = vcmp.eq.f32.partialorder %v3665_v33, 0.0  ;;  %v1629_v20 = vand.u32 2147483648, %v3665_v33  ;;  %2586 = vrsqrt.f32 %v3716_v35  ;;  %v1382_v30 = vsel %vm1380_vm11, %v1381_v8, %v1379_v34 }
 0x192   : > { %v1224_v3 = vadd.f32 %v1139_v15, %v3544_v52  ;;  %v1188_v62 = vpop.f32.mrf.mxu3  ;;  %v1633_v19 = vmul.f32 %v2581_v4, %v1632_v50  ;;  %v1391_v52 = vsel %vm1390_vm12, %v3648_v10, %v1389_v2  ;;  %v1623_v56 = vsub.f32 1.5, %v1622_v26 }
 0x193   : > { %v1225_v0 = vadd.f32 %v1188_v62, %v985_v60  ;;  %v951_v13 = vpop.f32.mrf.mxu1  ;;  %v2583_v12 = vpop.eup %2582  ;;  %v1394_v7 = vsel %vm1392_vm13, %v1393_v40, %v1391_v52  ;;  %vm1638_vm0 = vcmp.eq.f32.partialorder %v3687_v37, inf  ;;  %vm1640_vm1 = vcmp.eq.f32.partialorder %v3687_v37, 0.0 }
 0x194   : > { %v1268_v32 = vmul.f32 %v1224_v3, %v1224_v3  ;;  %v1634_v22 = vmul.f32 0.5, %v1633_v19  ;;  %v1741_v1 = vpack.c.bf16 %v1394_v7, %v1382_v30  ;;  %v1624_v61 = vmul.f32 %v2579_v55, %v1623_v56  ;;  %v909_v56 = vpop.f32.mrf.mxu0 }
 0x195   : > { %v1252_v54 = vsel %vm1240_vm4, 0.0, %v1225_v0  ;;  %v1524_v44 = vmul.f32 %v1225_v0, %v1225_v0  ;;  %v1396_v58 = vmul.f32 %v2583_v12, %v3699_v63  ;;  %v2585_v46 = vpop.eup %2584  ;;  %v987_v55 = vadd.f32 %v951_v13, %v3420_v17 }
 0x196   : > { %v1284_v53 = vmul.f32 %v1252_v54, %v1252_v54  ;;  %v1635_v43 = vsub.f32 1.5, %v1634_v22  ;;  %1929 = vmatmul.bf16.gmra.mxu0 %v1741_v1  ;;  %v1625_v8 = vmul.f32 %v1624_v61, %v3665_v33  ;;  %v1408_v51 = vmul.f32 %v2585_v46, %v3704_v59 }
 0x197   : > { %v3745_v9 = vadd.f32 1e-09, %v1524_v44  ;;  %v1397_v10 = vmul.f32 %v2583_v12, %v1396_v58  ;;  %v2587_v39 = vpop.eup %2586  ;;  %v1641_v47 = vand.u32 2147483648, %v3687_v37  ;;  %vm1402_vm2 = vcmp.eq.f32.partialorder %v3699_v63, inf }
 0x198   : > { %v1300_v48 = vadd.f32 %v1284_v53, %v1268_v32  ;;  %v1636_v28 = vmul.f32 %v2581_v4, %v1635_v43  ;;  %v1627_v49 = vsel %vm1626_vm14, %v3665_v33, %v1625_v8  ;;  %vm1404_vm3 = vcmp.eq.f32.partialorder %v3699_v63, 0.0 }
 0x199   : > { %v1142_v31 = vpop.f32.mrf.mxu2  ;;  %2588 = vrsqrt.f32 %v3745_v9  ;;  %v1398_v25 = vmul.f32 0.5, %v1397_v10  ;;  %v1630_v45 = vsel %vm1628_vm15, %v1629_v20, %v1627_v49  ;;  %v1409_v57 = vmul.f32 %v2585_v46, %v1408_v51 }
 0x19a   : > { %v1226_v14 = vadd.f32 %v1142_v31, %v3546_v41  ;;  %v1191_v29 = vpop.f32.mrf.mxu3  ;;  %v1637_v4 = vmul.f32 %v1636_v28, %v3687_v37  ;;  %1796 = vperm.xlu0 %2550, %v1630_v45   ;;  %v1405_v60 = vand.u32 2147483648, %v3699_v63  ;;  %v1644_v41 = vmul.f32 %v2587_v39, %v3716_v35 }
 0x19b   : > { %v1227_v17 = vadd.f32 %v1191_v29, %v987_v55  ;;  %v953_v40 = vpop.f32.mrf.mxu1  ;;  %v1399_v50 = vsub.f32 1.5, %v1398_v25  ;;  %v3766_v15 = vadd.f32 1e-09, %v3721_v42  ;;  %v1410_v3 = vmul.f32 0.5, %v1409_v57 }
 0x19c   : > { %v1269_v16 = vmul.f32 %v1226_v14, %v1226_v14  ;;  %v1639_v34 = vsel %vm1638_vm0, %v3687_v37, %v1637_v4  ;;  %v1645_v0 = vmul.f32 %v2587_v39, %v1644_v41  ;;  %vm1414_vm5 = vcmp.eq.f32.partialorder %v3704_v59, inf }
 0x19d   : > { %v1253_v33 = vsel %vm1240_vm4, 0.0, %v1227_v17  ;;  %v1642_v2 = vsel %vm1640_vm1, %v1641_v47, %v1639_v34  ;;  %v1400_v26 = vmul.f32 %v2583_v12, %v1399_v50  ;;  %v1525_v20 = vmul.f32 %v1227_v17, %v1227_v17 }
 0x19e   : > { %v1285_v62 = vmul.f32 %v1253_v33, %v1253_v33  ;;  %1801 = vperm.xlu1 %2551, %v1642_v2   ;;  %v1411_v19 = vsub.f32 1.5, %v1410_v3  ;;  %vm1416_vm6 = vcmp.eq.f32.partialorder %v3704_v59, 0.0  ;;  %v1646_v30 = vmul.f32 0.5, %v1645_v0  ;;  %v912_v3 = vpop.f32.mrf.mxu0 }
 0x19f   : > { %v2589_v13 = vpop.eup %2588  ;;  %v1401_v32 = vmul.f32 %v1400_v26, %v3699_v63  ;;  %v989_v37 = vadd.f32 %v953_v40, %v3430_v21  ;;  %v1417_v44 = vand.u32 2147483648, %v3704_v59  ;;  %2590 = vrsqrt.f32 %v3766_v15 }
 0x1a0   : > { %v1301_v42 = vadd.f32 %v1285_v62, %v1269_v16  ;;  %v1656_v52 = vmul.f32 %v2589_v13, %v3745_v9  ;;  %v1412_v12 = vmul.f32 %v2585_v46, %v1411_v19  ;;  %v3782_v7 = vadd.f32 1e-09, %v1300_v48 }
 0x1a1   : > { %v1144_v54 = vpop.f32.mrf.mxu2  ;;  %v1403_v1 = vsel %vm1402_vm2, %v3699_v63, %v1401_v32  ;;  %v1647_v61 = vsub.f32 1.5, %v1646_v30  ;;  %vm1650_vm7 = vcmp.eq.f32.partialorder %v3716_v35, inf  ;;  %v3790_v8 = vadd.f32 1e-09, %v1525_v20 }
 0x1a2   : > { %v1228_v22 = vadd.f32 %v1144_v54, %v3548_v5  ;;  %v1193_v53 = vpop.f32.mrf.mxu3  ;;  %v1413_v43 = vmul.f32 %v1412_v12, %v3704_v59  ;;  %v1657_v46 = vmul.f32 %v2589_v13, %v1656_v52  ;;  %v1406_v48 = vsel %vm1404_vm3, %v1405_v60, %v1403_v1 }
 0x1a3   : > { %v1229_v58 = vadd.f32 %v1193_v53, %v989_v37  ;;  %v956_v21 = vpop.f32.mrf.mxu1  ;;  %v1648_v5 = vmul.f32 %v2587_v39, %v1647_v61  ;;  %2592 = vrsqrt.f32 %v3782_v7  ;;  %vm1652_vm8 = vcmp.eq.f32.partialorder %v3716_v35, 0.0  ;;  %v4045_v53 = vld [vmem:[#allocation5_spill] sm:$0xff] }
 0x1a4   : > { %v1270_v10 = vmul.f32 %v1228_v22, %v1228_v22  ;;  %v1415_v31 = vsel %vm1414_vm5, %v3704_v59, %v1413_v43  ;;  %v1658_v28 = vmul.f32 0.5, %v1657_v46  ;;  %v1653_v39 = vand.u32 2147483648, %v3716_v35 }
 0x1a5   : > { %v1254_v51 = vsel %vm1240_vm4, 0.0, %v1229_v58  ;;  %v1526_v55 = vmul.f32 %v1229_v58, %v1229_v58  ;;  %v1418_v49 = vsel %vm1416_vm6, %v1417_v44, %v1415_v31  ;;  %v1649_v14 = vmul.f32 %v1648_v5, %v3716_v35  ;;  %v2591_v63 = vpop.eup %2590 }
 0x1a6   : > { %v1286_v47 = vmul.f32 %v1254_v51, %v1254_v51  ;;  %v1742_v29 = vpack.c.bf16 %v1418_v49, %v1406_v48  ;;  %v1659_v25 = vsub.f32 1.5, %v1658_v28  ;;  %v1420_v59 = vmul.f32 %v2591_v63, %v3766_v15 }
 0x1a7   : > { %v3805_v17 = vadd.f32 1e-09, %v1526_v55  ;;  %v1651_v40 = vsel %vm1650_vm7, %v3716_v35, %v1649_v14  ;;  %v991_v4 = vadd.f32 %v956_v21, %v3445_v18  ;;  %2594 = vrsqrt.f32 %v3790_v8 }
 0x1a8   : > { %v1302_v45 = vadd.f32 %v1286_v47, %v1270_v10  ;;  %1934 = vmatmul.bf16.gmra.mxu0 %v1742_v29  ;;  %v1654_v57 = vsel %vm1652_vm8, %v1653_v39, %v1651_v40  ;;  %v1660_v50 = vmul.f32 %v2589_v13, %v1659_v25  ;;  %v992_v60 = vadd.f32 %v909_v56, %v3685_v11 }
 0x1a9   : > { %v1147_v16 = vpop.f32.mrf.mxu2  ;;  %v716_v41 = vadd.f32 %v3460_v24, %v3284_v6  ;;  %1806 = vperm.xlu2 %2552, %v1654_v57   ;;  %v1421_v35 = vmul.f32 %v2591_v63, %v1420_v59  ;;  %vm1662_vm9 = vcmp.eq.f32.partialorder %v3745_v9, inf  ;;  %v1665_v26 = vand.u32 2147483648, %v3745_v9  ;;  %v2593_v0 = vpop.eup %2592 }
 0x1aa   : > { %v1230_v33 = vadd.f32 %v1147_v16, %v3628_v27  ;;  %v1196_v34 = vpop.f32.mrf.mxu3  ;;  %v1661_v18 = vmul.f32 %v1660_v50, %v3745_v9  ;;  %v3820_v13 = vadd.f32 1e-09, %v1301_v42  ;;  %2596 = vrsqrt.f32 %v3805_v17 }
 0x1ab   : > { %v1231_v62 = vadd.f32 %v1196_v34, %v991_v4  ;;  %v958_v2 = vpop.f32.mrf.mxu1  ;;  %v1422_v20 = vmul.f32 0.5, %v1421_v35  ;;  %vm1664_vm10 = vcmp.eq.f32.partialorder %v3745_v9, 0.0  ;;  %v1432_v27 = vmul.f32 %v2593_v0, %v3782_v7 }
 0x1ac   : > { %v1271_v11 = vmul.f32 %v1230_v33, %v1230_v33  ;;  %v1663_v24 = vsel %vm1662_vm9, %v3745_v9, %v1661_v18  ;;  %v994_v19 = vadd.f32 %v912_v3, %v716_v41  ;;  %v3830_v42 = vadd.f32 %v3469_v23, %v3290_v38 }
 0x1ad   : > { %v1255_v6 = vsel %vm1240_vm4, 0.0, %v1231_v62  ;;  %v1666_v30 = vsel %vm1664_vm10, %v1665_v26, %v1663_v24  ;;  %v1423_v52 = vsub.f32 1.5, %v1422_v20  ;;  %v2595_v56 = vpop.eup %2594  ;;  %v3832_v37 = vadd.f32 1e-09, %v1302_v45  ;;  %v914_v26 = vpop.f32.mrf.mxu0 }
 0x1ae   : > { %v1287_v32 = vmul.f32 %v1255_v6, %v1255_v6  ;;  %1811 = vperm.xlu0 %2550, %v1666_v30   ;;  %vm1426_vm11 = vcmp.eq.f32.partialorder %v3766_v15, inf  ;;  %v1433_v54 = vmul.f32 %v2593_v0, %v1432_v27  ;;  %vm1428_vm12 = vcmp.eq.f32.partialorder %v3766_v15, 0.0 }
 0x1af   : > { %v1424_v9 = vmul.f32 %v2591_v63, %v1423_v52  ;;  %v1668_v44 = vmul.f32 %v2595_v56, %v3790_v8  ;;  %2598 = vrsqrt.f32 %v3820_v13  ;;  %v1527_v22 = vmul.f32 %v1231_v62, %v1231_v62 }
 0x1b0   : > { %v3835_v12 = vadd.f32 %v1287_v32, %v1271_v11  ;;  %v993_v1 = vadd.f32 %v958_v2, %v4045_v53  ;;  %v1429_v23 = vand.u32 2147483648, %v3766_v15  ;;  %v1434_v61 = vmul.f32 0.5, %v1433_v54  ;;  %v2597_v58 = vpop.eup %2596 }
 0x1b1   : > { %v1149_v38 = vpop.f32.mrf.mxu2  ;;  %v1425_v46 = vmul.f32 %v1424_v9, %v3766_v15  ;;  %vm1438_vm13 = vcmp.eq.f32.partialorder %v3782_v7, inf  ;;  %v1669_v10 = vmul.f32 %v2595_v56, %v1668_v44  ;;  %v1680_v51 = vmul.f32 %v2597_v58, %v3805_v17 }
 0x1b2   : > { %v1232_v43 = vadd.f32 %v1149_v38, %v992_v60  ;;  %v1198_v21 = vpop.f32.mrf.mxu3  ;;  %v1435_v5 = vsub.f32 1.5, %v1434_v61  ;;  %2600 = vrsqrt.f32 %v3832_v37  ;;  %vm1440_vm14 = vcmp.eq.f32.partialorder %v3782_v7, 0.0  ;;  %v4046_v60 = vld [vmem:[#allocation6_spill] sm:$0xff] }
 0x1b3   : > { %v1233_v48 = vadd.f32 %v1198_v21, %v993_v1  ;;  %v1441_v31 = vand.u32 2147483648, %v3782_v7  ;;  %v961_v28 = vpop.f32.mrf.mxu1  ;;  %v1670_v47 = vmul.f32 0.5, %v1669_v10  ;;  %v3848_v49 = vadd.f32 1e-09, %v1527_v22 }
 0x1b4   : > { %v1272_v55 = vmul.f32 %v1232_v43, %v1232_v43  ;;  %v1427_v63 = vsel %vm1426_vm11, %v3766_v15, %v1425_v46  ;;  %v1436_v29 = vmul.f32 %v2593_v0, %v1435_v5  ;;  %v1681_v59 = vmul.f32 %v2597_v58, %v1680_v51 }
 0x1b5   : > { %v1256_v14 = vsel %vm1240_vm4, 0.0, %v1233_v48  ;;  %v2599_v39 = vpop.eup %2598  ;;  %v1528_v45 = vmul.f32 %v1233_v48, %v1233_v48  ;;  %v1671_v40 = vsub.f32 1.5, %v1670_v47  ;;  %vm1674_vm15 = vcmp.eq.f32.partialorder %v3790_v8, inf  ;;  %v4047_v48 = vld [vmem:[#allocation7_spill] sm:$0xff] }
 0x1b6   : > { %v1288_v25 = vmul.f32 %v1256_v14, %v1256_v14  ;;  %v1437_v4 = vmul.f32 %v1436_v29, %v3782_v7  ;;  %v1677_v57 = vand.u32 2147483648, %v3790_v8  ;;  %v1444_v16 = vmul.f32 %v2599_v39, %v3820_v13 }
 0x1b7   : > { %v995_v41 = vadd.f32 %v961_v28, %v4046_v60  ;;  %v1672_v33 = vmul.f32 %v2595_v56, %v1671_v40  ;;  %v1682_v34 = vmul.f32 0.5, %v1681_v59  ;;  %v1430_v3 = vsel %vm1428_vm12, %v1429_v23, %v1427_v63 }
 0x1b8   : > { %v1304_v50 = vadd.f32 %v1288_v25, %v1272_v55  ;;  %v3860_v35 = vpop.eup %2600  ;;  %v1439_v62 = vsel %vm1438_vm13, %v3782_v7, %v1437_v4  ;;  %v1445_v18 = vmul.f32 %v2599_v39, %v1444_v16  ;;  %2602 = vrsqrt.f32 %v3848_v49 }
 0x1b9   : > { %v1152_v2 = vpop.f32.mrf.mxu2  ;;  %v3868_v0 = vadd.f32 1e-09, %v1528_v45  ;;  %v1442_v11 = vsel %vm1440_vm14, %v1441_v31, %v1439_v62  ;;  %v1673_v20 = vmul.f32 %v1672_v33, %v3790_v8  ;;  %v1683_v32 = vsub.f32 1.5, %v1682_v34 }
 0x1ba   : > { %v1234_v6 = vadd.f32 %v1152_v2, %v994_v19  ;;  %v1201_v24 = vpop.f32.mrf.mxu3  ;;  %v1743_v15 = vpack.c.bf16 %v1442_v11, %v1430_v3  ;;  %v1446_v30 = vmul.f32 0.5, %v1445_v18  ;;  %vm1676_vm0 = vcmp.eq.f32.partialorder %v3790_v8, 0.0 }
 0x1bb   : > { %v1235_v27 = vadd.f32 %v1201_v24, %v995_v41  ;;  %v1675_v52 = vsel %vm1674_vm15, %v3790_v8, %v1673_v20  ;;  %v1456_v54 = vmul.f32 %v3860_v35, %v3832_v37  ;;  %v996_v7 = vadd.f32 %v914_v26, %v3830_v42  ;;  %v963_v53 = vpop.f32.mrf.mxu1 }
 0x1bc   : > { %v1273_v56 = vmul.f32 %v1234_v6, %v1234_v6  ;;  %1939 = vmatmul.bf16.gmra.mxu0 %v1743_v15  ;;  %v1678_v9 = vsel %vm1676_vm0, %v1677_v57, %v1675_v52  ;;  %v1684_v44 = vmul.f32 %v2597_v58, %v1683_v32  ;;  %vm1686_vm1 = vcmp.eq.f32.partialorder %v3805_v17, inf }
 0x1bd   : > { %v1257_v19 = vsel %vm1240_vm4, 0.0, %v1235_v27  ;;  %1816 = vperm.xlu1 %2551, %v1678_v9   ;;  %v1447_v1 = vsub.f32 1.5, %v1446_v30  ;;  %v1457_v8 = vmul.f32 %v3860_v35, %v1456_v54  ;;  %v3885_v23 = vadd.f32 1e-09, %v3835_v12 }
 0x1be   : > { %v1289_v22 = vmul.f32 %v1257_v19, %v1257_v19  ;;  %v2603_v38 = vpop.eup %2602  ;;  %v1685_v42 = vmul.f32 %v1684_v44, %v3805_v17  ;;  %v1689_v61 = vand.u32 2147483648, %v3805_v17  ;;  %2604 = vrsqrt.f32 %v3868_v0 }
 0x1bf   : > { %v1448_v58 = vmul.f32 %v2599_v39, %v1447_v1  ;;  %v1458_v21 = vmul.f32 0.5, %v1457_v8  ;;  %v1692_v46 = vmul.f32 %v2603_v38, %v3848_v49  ;;  %v1529_v10 = vmul.f32 %v1235_v27, %v1235_v27 }
 0x1c0   : > { %v1305_v43 = vadd.f32 %v1289_v22, %v1273_v56  ;;  %v997_v5 = vadd.f32 %v963_v53, %v4047_v48  ;;  %v1687_v51 = vsel %vm1686_vm1, %v3805_v17, %v1685_v42  ;;  %vm1688_vm2 = vcmp.eq.f32.partialorder %v3805_v17, 0.0 }
 0x1c1   : > { %v1154_v12 = vpop.f32.mrf.mxu2  ;;  %v3894_v55 = vadd.f32 1e-09, %v1304_v50  ;;  %v1690_v31 = vsel %vm1688_vm2, %v1689_v61, %v1687_v51  ;;  %v1449_v14 = vmul.f32 %v1448_v58, %v3820_v13  ;;  %v1459_v29 = vsub.f32 1.5, %v1458_v21 }
 0x1c2   : > { %v1236_v28 = vadd.f32 %v1154_v12, %v996_v7  ;;  %v1203_v47 = vpop.f32.mrf.mxu3  ;;  %1821 = vperm.xlu2 %2552, %v1690_v31   ;;  %v1693_v39 = vmul.f32 %v2603_v38, %v1692_v46  ;;  %2606 = vrsqrt.f32 %v3885_v23  ;;  %vm1450_vm3 = vcmp.eq.f32.partialorder %v3820_v13, inf }
 0x1c3   : > { %v1237_v63 = vadd.f32 %v1203_v47, %v997_v5  ;;  %vm1452_vm5 = vcmp.eq.f32.partialorder %v3820_v13, 0.0  ;;  %v1453_v17 = vand.u32 2147483648, %v3820_v13  ;;  %v3901_v40 = vadd.f32 1e-09, %v1529_v10 }
 0x1c4   : > { %v1274_v25 = vmul.f32 %v1236_v28, %v1236_v28  ;;  %v2605_v45 = vpop.eup %2604  ;;  %v1460_v57 = vmul.f32 %v3860_v35, %v1459_v29  ;;  %vm1462_vm6 = vcmp.eq.f32.partialorder %v3832_v37, inf  ;;  %v1694_v50 = vmul.f32 0.5, %v1693_v39 }
 0x1c5   : > { %v1258_v59 = vsel %vm1240_vm4, 0.0, %v1237_v63  ;;  %v1530_v4 = vmul.f32 %v1237_v63, %v1237_v63  ;;  %v1704_v60 = vmul.f32 %v2605_v45, %v3868_v0  ;;  %v1451_v41 = vsel %vm1450_vm3, %v3820_v13, %v1449_v14 }
 0x1c6   : > { %v1290_v16 = vmul.f32 %v1258_v59, %v1258_v59  ;;  %v1461_v33 = vmul.f32 %v1460_v57, %v3832_v37  ;;  %v1465_v34 = vand.u32 2147483648, %v3832_v37  ;;  %2608 = vrsqrt.f32 %v3894_v55 }
 0x1c7   : > { %v3912_v36 = vadd.f32 1e-09, %v1530_v4  ;;  %v1695_v62 = vsub.f32 1.5, %v1694_v50  ;;  %v1705_v2 = vmul.f32 %v2605_v45, %v1704_v60  ;;  %v3914_v18 = vadd.f32 1e-09, %v1305_v43 }
 0x1c8   : > { %v1306_v3 = vadd.f32 %v1290_v16, %v1274_v25  ;;  %v2607_v35 = vpop.eup %2606  ;;  %v1463_v26 = vsel %vm1462_vm6, %v3832_v37, %v1461_v33  ;;  %vm1464_vm4 = vcmp.eq.f32.partialorder %v3832_v37, 0.0  ;;  %2610 = vrsqrt.f32 %v3901_v40 }
 0x1c9   : > { %v1454_v11 = vsel %vm1452_vm5, %v1453_v17, %v1451_v41  ;;  %v1466_v20 = vsel %vm1464_vm4, %v1465_v34, %v1463_v26  ;;  %v1696_v6 = vmul.f32 %v2603_v38, %v1695_v62  ;;  %v1706_v24 = vmul.f32 0.5, %v1705_v2 }
 0x1ca   : > { %v1744_v15 = vpack.c.bf16 %v1466_v20, %v1454_v11  ;;  %v1468_v27 = vmul.f32 %v2607_v35, %v3885_v23  ;;  %v3922_v32 = vadd.f32 1e-09, %v1306_v3  ;;  %2612 = vrsqrt.f32 %v3912_v36 }
 0x1cb   : > { %v1697_v30 = vmul.f32 %v1696_v6, %v3848_v49  ;;  %v1707_v52 = vsub.f32 1.5, %v1706_v24  ;;  %vm1698_vm7 = vcmp.eq.f32.partialorder %v3848_v49, inf  ;;  %v1701_v13 = vand.u32 2147483648, %v3848_v49 }
 0x1cc   : > { %v2609_v56 = vpop.eup %2608  ;;  %1944 = vmatmul.bf16.gmra.mxu0 %v1744_v15  ;;  %v1469_v37 = vmul.f32 %v2607_v35, %v1468_v27  ;;  %2614 = vrsqrt.f32 %v3914_v18  ;;  %vm1700_vm8 = vcmp.eq.f32.partialorder %v3848_v49, 0.0  ;;  %vm1710_vm9 = vcmp.eq.f32.partialorder %v3868_v0, inf }
 0x1cd   : > { %v1699_v54 = vsel %vm1698_vm7, %v3848_v49, %v1697_v30  ;;  %v1708_v7 = vmul.f32 %v2605_v45, %v1707_v52  ;;  %v1480_v9 = vmul.f32 %v2609_v56, %v3894_v55  ;;  %2616 = vrsqrt.f32 %v3922_v32 }
 0x1ce   : > { %v2611_v19 = vpop.eup %2610  ;;  %v1702_v44 = vsel %vm1700_vm8, %v1701_v13, %v1699_v54  ;;  %v1470_v22 = vmul.f32 0.5, %v1469_v37  ;;  %v1713_v38 = vand.u32 2147483648, %v3868_v0  ;;  %vm1712_vm10 = vcmp.eq.f32.partialorder %v3868_v0, 0.0 }
 0x1cf   : > { %1826 = vperm.xlu0 %2550, %v1702_v44   ;;  %v1709_v53 = vmul.f32 %v1708_v7, %v3868_v0  ;;  %v1481_v1 = vmul.f32 %v2609_v56, %v1480_v9  ;;  %v1716_v8 = vmul.f32 %v2611_v19, %v3901_v40  ;;  %vm1474_vm11 = vcmp.eq.f32.partialorder %v3885_v23, inf  ;;  %v3979_v44 = vld [vmem:[%s4038_s4] ss:$0 sm:$0xff] }
 0x1d0   : > { %v1471_v42 = vsub.f32 1.5, %v1470_v22  ;;  %v2613_v49 = vpop.eup %2612  ;;  %vm1476_vm12 = vcmp.eq.f32.partialorder %v3885_v23, 0.0  ;;  %v1477_v47 = vand.u32 2147483648, %v3885_v23  ;;  %vm1486_vm13 = vcmp.eq.f32.partialorder %v3894_v55, inf }
 0x1d1   : > { %v1711_v61 = vsel %vm1710_vm9, %v3868_v0, %v1709_v53  ;;  %v1482_v43 = vmul.f32 0.5, %v1481_v1  ;;  %v1717_v58 = vmul.f32 %v2611_v19, %v1716_v8  ;;  %v1728_v48 = vmul.f32 %v2613_v49, %v3912_v36 }
 0x1d2   : > { %v2615_v21 = vpop.eup %2614  ;;  %v1714_v46 = vsel %vm1712_vm10, %v1713_v38, %v1711_v61  ;;  %v1472_v10 = vmul.f32 %v2607_v35, %v1471_v42  ;;  %vm1488_vm14 = vcmp.eq.f32.partialorder %v3894_v55, 0.0  ;;  %v1489_v57 = vand.u32 2147483648, %v3894_v55 }
 0x1d3   : > { %1831 = vperm.xlu1 %2551, %v1714_v46   ;;  %v1483_v5 = vsub.f32 1.5, %v1482_v43  ;;  %v1718_v51 = vmul.f32 0.5, %v1717_v58  ;;  %v1492_v12 = vmul.f32 %v2615_v21, %v3914_v18  ;;  %v1729_v28 = vmul.f32 %v2613_v49, %v1728_v48  ;;  %v2617_v0 = vpop.eup %2616 }
 0x1d4   : > { %v1473_v31 = vmul.f32 %v1472_v10, %v3885_v23  ;;  %v1504_v25 = vmul.f32 %v2617_v0, %v3922_v32  ;;  %vm1722_vm15 = vcmp.eq.f32.partialorder %v3901_v40, inf  ;;  %v1725_v33 = vand.u32 2147483648, %v3901_v40 }
 0x1d5   : > { %v1484_v14 = vmul.f32 %v2609_v56, %v1483_v5  ;;  %v1719_v63 = vsub.f32 1.5, %v1718_v51  ;;  %v1493_v29 = vmul.f32 %v2615_v21, %v1492_v12  ;;  %v1730_v39 = vmul.f32 0.5, %v1729_v28 }
 0x1d6   : > { %v1475_v17 = vsel %vm1474_vm11, %v3885_v23, %v1473_v31  ;;  %v1505_v50 = vmul.f32 %v2617_v0, %v1504_v25  ;;  %vm1724_vm0 = vcmp.eq.f32.partialorder %v3901_v40, 0.0  ;;  %vm1734_vm1 = vcmp.eq.f32.partialorder %v3912_v36, inf }
 0x1d7   : > { %v1485_v45 = vmul.f32 %v1484_v14, %v3894_v55  ;;  %v1720_v59 = vmul.f32 %v2611_v19, %v1719_v63  ;;  %v1494_v4 = vmul.f32 0.5, %v1493_v29  ;;  %v1731_v16 = vsub.f32 1.5, %v1730_v39 }
 0x1d8   : > { %v1478_v3 = vsel %vm1476_vm12, %v1477_v47, %v1475_v17  ;;  %v1506_v35 = vmul.f32 0.5, %v1505_v50  ;;  %v1737_v23 = vand.u32 2147483648, %v3912_v36  ;;  %vm1736_vm2 = vcmp.eq.f32.partialorder %v3912_v36, 0.0  ;;  %v1767_v19 = vpop.permute.xlu0 %1766 }
 0x1d9   : > { %v1487_v60 = vsel %vm1486_vm13, %v3894_v55, %v1485_v45  ;;  %v1721_v41 = vmul.f32 %v1720_v59, %v3901_v40  ;;  %v1495_v34 = vsub.f32 1.5, %v1494_v4  ;;  %v1732_v2 = vmul.f32 %v2613_v49, %v1731_v16 }
 0x1da   : > { %v1490_v62 = vsel %vm1488_vm14, %v1489_v57, %v1487_v60  ;;  %v1507_v15 = vsub.f32 1.5, %v1506_v35  ;;  %vm1498_vm3 = vcmp.eq.f32.partialorder %v3914_v18, inf  ;;  %v1501_v13 = vand.u32 2147483648, %v3914_v18 }
 0x1db   : > { %v1745_v26 = vpack.c.bf16 %v1490_v62, %v1478_v3  ;;  %v1723_v11 = vsel %vm1722_vm15, %v3901_v40, %v1721_v41  ;;  %v1496_v20 = vmul.f32 %v2615_v21, %v1495_v34  ;;  %v1733_v24 = vmul.f32 %v1732_v2, %v3912_v36 }
 0x1dc   : > { %v1726_v6 = vsel %vm1724_vm0, %v1725_v33, %v1723_v11  ;;  %v1508_v30 = vmul.f32 %v2617_v0, %v1507_v15  ;;  %vm1510_vm5 = vcmp.eq.f32.partialorder %v3922_v32, inf  ;;  %v1513_v37 = vand.u32 2147483648, %v3922_v32 }
 0x1dd   : > { %1949 = vmatmul.bf16.gmra.mxu0 %v1745_v26  ;;  %1836 = vperm.xlu2 %2552, %v1726_v6   ;;  %v1497_v55 = vmul.f32 %v1496_v20, %v3914_v18  ;;  %v1735_v27 = vsel %vm1734_vm1, %v3912_v36, %v1733_v24  ;;  %vm1500_vm6 = vcmp.eq.f32.partialorder %v3914_v18, 0.0  ;;  %vm1512_vm4 = vcmp.eq.f32.partialorder %v3922_v32, 0.0 }
 0x1de   : > { %v1738_v52 = vsel %vm1736_vm2, %v1737_v23, %v1735_v27  ;;  %v1509_v56 = vmul.f32 %v1508_v30, %v3922_v32  ;;  %v1847_v53 = vmul.f32 %v3979_v44, %v1767_v19 }
 0x1df   : > { %1841 = vperm.xlu0 %2550, %v1738_v52   ;;  %v1499_v40 = vsel %vm1498_vm3, %v3914_v18, %v1497_v55 }
 0x1e0   : > { %v1511_v54 = vsel %vm1510_vm5, %v3922_v32, %v1509_v56  ;;  %v1502_v36 = vsel %vm1500_vm6, %v1501_v13, %v1499_v40  ;;  %v1772_v8 = vpop.permute.xlu0 %1771  ;;  %v1787_v0 = vpop.permute.xlu2 %1786 }
 0x1e1   : > { %v1514_v7 = vsel %vm1512_vm4, %v1513_v37, %v1511_v54  ;;  %v1848_v42 = vmul.f32 %v3979_v44, %v1772_v8  ;;  %v1851_v29 = vmul.f32 %v3979_v44, %v1787_v0 }
 0x1e2   : > { %v1746_v9 = vpack.c.bf16 %v1514_v7, %v1502_v36 }
 0x1e8   : > { %v1777_v49 = vpop.permute.xlu1 %1776  ;;  %v1792_v45 = vpop.permute.xlu2 %1791 }
 0x1e9   : > { %v1849_v58 = vmul.f32 %v3979_v44, %v1777_v49  ;;  %v1852_v57 = vmul.f32 %v3979_v44, %v1792_v45 }
 0x1ed   : > { %1954 = vmatmul.bf16.gmra.mxu0 %v1746_v9 }
 0x1f0   : > { %v1920_v22 = vpop.f32.mrf.mxu0  ;;  %v1782_v48 = vpop.permute.xlu1 %1781 }
 0x1f1   : > { %v1921_v1 = vadd.f32 %v1920_v22, %v1847_v53  ;;  %v1850_v12 = vmul.f32 %v3979_v44, %v1782_v48 }
 0x1f3   : > { %v1960_v18 = vmax.f32 %v1921_v1, 1e-05 }
 0x1f5   : > { %2618 = vlog2.f32 %v1960_v18 }
 0x1f8   : > { %v1922_v38 = vpop.f32.mrf.mxu0 }
 0x1f9   : > { %v1923_v32 = vadd.f32 %v1922_v38, %v1848_v42 }
 0x1fb   : > { %v1961_v61 = vmax.f32 %v1923_v32, 1e-05  ;;  %v2619_v43 = vpop.eup %2618 }
 0x1fc   : > { %v1977_v10 = vmul.f32 0.6931472, %v2619_v43 }
 0x1fd   : > { %2620 = vlog2.f32 %v1961_v61 }
 0x202   : > { %v1925_v21 = vpop.f32.mrf.mxu0 }
 0x203   : > { %v1926_v46 = vadd.f32 %v1925_v21, %v1849_v58  ;;  %v2621_v51 = vpop.eup %2620  ;;  %v1807_v30 = vpop.permute.xlu2 %1806 }
 0x204   : > { %v1979_v47 = vmul.f32 0.6931472, %v2621_v51  ;;  %v1855_v40 = vmul.f32 %v3979_v44, %v1807_v30 }
 0x205   : > { %v1962_v5 = vmax.f32 %v1926_v46, 1e-05 }
 0x207   : > { %2622 = vlog2.f32 %v1962_v5 }
 0x208   : > { %2008 = vxpose.xlu1.b32.start [1/16] (narrow) %v1977_v10, 32 }
 0x20a   : > { %v1927_v31 = vpop.f32.mrf.mxu0 }
 0x20b   : > { %v1928_v28 = vadd.f32 %v1927_v31, %v1850_v12 }
 0x20c   : > { %v1797_v41 = vpop.permute.xlu0 %1796 }
 0x20d   : > { %v1963_v14 = vmax.f32 %v1928_v28, 1e-05  ;;  %v2623_v63 = vpop.eup %2622  ;;  %v1853_v3 = vmul.f32 %v3979_v44, %v1797_v41 }
 0x20e   : > { %v1981_v17 = vmul.f32 0.6931472, %v2623_v63 }
 0x20f   : > { %2624 = vlog2.f32 %v1963_v14 }
 0x210   : > { %2009 = vxpose.xlu1.b32.cont [2/16] (narrow) %v1979_v47, 32  ;;  %v1802_v26 = vpop.permute.xlu1 %1801 }
 0x211   : > { %v1854_v6 = vmul.f32 %v3979_v44, %v1802_v26 }
 0x213   : > { %v1930_v39 = vpop.f32.mrf.mxu0 }
 0x214   : > { %v1931_v25 = vadd.f32 %v1930_v39, %v1851_v29 }
 0x215   : > { %v2625_v4 = vpop.eup %2624 }
 0x216   : > { %v1964_v59 = vmax.f32 %v1931_v25, 1e-05  ;;  %v1983_v60 = vmul.f32 0.6931472, %v2625_v4 }
 0x218   : > { %2010 = vxpose.xlu1.b32.cont [3/16] (narrow) %v1981_v17, 32  ;;  %2626 = vlog2.f32 %v1964_v59 }
 0x21b   : > { %v1932_v16 = vpop.f32.mrf.mxu0 }
 0x21c   : > { %v1933_v50 = vadd.f32 %v1932_v16, %v1852_v57  ;;  %v1822_v43 = vpop.permute.xlu2 %1821 }
 0x21d   : > { %v1858_v21 = vmul.f32 %v3979_v44, %v1822_v43 }
 0x21e   : > { %v1965_v33 = vmax.f32 %v1933_v50, 1e-05  ;;  %v2627_v34 = vpop.eup %2626 }
 0x21f   : > { %v1985_v2 = vmul.f32 0.6931472, %v2627_v34 }
 0x220   : > { %2011 = vxpose.xlu1.b32.cont [4/16] (narrow) %v1983_v60, 32  ;;  %2628 = vlog2.f32 %v1965_v33  ;;  %v1812_v36 = vpop.permute.xlu0 %1811 }
 0x221   : > { %v1856_v9 = vmul.f32 %v3979_v44, %v1812_v36 }
 0x225   : > { %v1935_v62 = vpop.f32.mrf.mxu0 }
 0x226   : > { %v1936_v35 = vadd.f32 %v1935_v62, %v1853_v3  ;;  %v2629_v20 = vpop.eup %2628 }
 0x227   : > { %v1987_v15 = vmul.f32 0.6931472, %v2629_v20 }
 0x228   : > { %2012 = vxpose.xlu1.b32.cont [5/16] (narrow) %v1985_v2, 32  ;;  %v1966_v11 = vmax.f32 %v1936_v35, 1e-05 }
 0x22a   : > { %2630 = vlog2.f32 %v1966_v11 }
 0x22d   : > { %v1937_v24 = vpop.f32.mrf.mxu0 }
 0x22e   : > { %v1938_v23 = vadd.f32 %v1937_v24, %v1854_v6 }
 0x22f   : > { %v1817_v8 = vpop.permute.xlu1 %1816 }
 0x230   : > { %2013 = vxpose.xlu1.b32.cont [6/16] (narrow) %v1987_v15, 32  ;;  %v1967_v55 = vmax.f32 %v1938_v23, 1e-05  ;;  %v2631_v27 = vpop.eup %2630  ;;  %v1857_v38 = vmul.f32 %v3979_v44, %v1817_v8 }
 0x231   : > { %v1989_v52 = vmul.f32 0.6931472, %v2631_v27 }
 0x232   : > { %2632 = vlog2.f32 %v1967_v55 }
 0x237   : > { %v1837_v4 = vpop.permute.xlu2 %1836 }
 0x238   : > { %2014 = vxpose.xlu1.b32.cont [7/16] (narrow) %v1989_v52, 32  ;;  %v2633_v37 = vpop.eup %2632  ;;  %v1861_v16 = vmul.f32 %v3979_v44, %v1837_v4 }
 0x239   : > { %v1940_v56 = vpop.f32.mrf.mxu0  ;;  %v1991_v7 = vmul.f32 0.6931472, %v2633_v37 }
 0x23a   : > { %v1941_v13 = vadd.f32 %v1940_v56, %v1855_v40 }
 0x23c   : > { %v1968_v54 = vmax.f32 %v1941_v13, 1e-05 }
 0x23e   : > { %2634 = vlog2.f32 %v1968_v54 }
 0x240   : > { %2015 = vxpose.xlu1.b32.cont [8/16] (narrow) %v1991_v7, 32 }
 0x241   : > { %v1942_v19 = vpop.f32.mrf.mxu0  ;;  %v1827_v51 = vpop.permute.xlu0 %1826 }
 0x242   : > { %v1943_v22 = vadd.f32 %v1942_v19, %v1856_v9  ;;  %v1859_v31 = vmul.f32 %v3979_v44, %v1827_v51 }
 0x244   : > { %v2635_v53 = vpop.eup %2634  ;;  %v1969_v1 = vmax.f32 %v1943_v22, 1e-05 }
 0x245   : > { %v1993_v18 = vmul.f32 0.6931472, %v2635_v53  ;;  %v1832_v63 = vpop.permute.xlu1 %1831 }
 0x246   : > { %2636 = vlog2.f32 %v1969_v1  ;;  %v1860_v39 = vmul.f32 %v3979_v44, %v1832_v63 }
 0x248   : > { %2016 = vxpose.xlu1.b32.cont [9/16] (narrow) %v1993_v18, 32 }
 0x249   : > { %v1945_v42 = vpop.f32.mrf.mxu0 }
 0x24a   : > { %v1946_v32 = vadd.f32 %v1945_v42, %v1857_v38 }
 0x24c   : > { %v2637_v49 = vpop.eup %2636  ;;  %v1970_v61 = vmax.f32 %v1946_v32, 1e-05 }
 0x24d   : > { %v1995_v58 = vmul.f32 0.6931472, %v2637_v49 }
 0x24e   : > { %2638 = vlog2.f32 %v1970_v61 }
 0x250   : > { %2017 = vxpose.xlu1.b32.cont [10/16] (narrow) %v1995_v58, 32 }
 0x251   : > { %v1947_v46 = vpop.f32.mrf.mxu0  ;;  %v1842_v34 = vpop.permute.xlu0 %1841 }
 0x252   : > { %v1948_v10 = vadd.f32 %v1947_v46, %v1858_v21  ;;  %v1862_v62 = vmul.f32 %v3979_v44, %v1842_v34 }
 0x254   : > { %v2639_v48 = vpop.eup %2638  ;;  %v1971_v5 = vmax.f32 %v1948_v10, 1e-05 }
 0x255   : > { %v1997_v12 = vmul.f32 0.6931472, %v2639_v48 }
 0x256   : > { %2640 = vlog2.f32 %v1971_v5 }
 0x258   : > { %2018 = vxpose.xlu1.b32.cont [11/16] (narrow) %v1997_v12, 32 }
 0x25a   : > { %v1950_v28 = vpop.f32.mrf.mxu0 }
 0x25b   : > { %v1951_v0 = vadd.f32 %v1950_v28, %v1859_v31 }
 0x25c   : > { %v2641_v47 = vpop.eup %2640 }
 0x25d   : > { %v1972_v14 = vmax.f32 %v1951_v0, 1e-05  ;;  %v1999_v29 = vmul.f32 0.6931472, %v2641_v47 }
 0x25f   : > { %2642 = vlog2.f32 %v1972_v14 }
 0x260   : > { %2019 = vxpose.xlu1.b32.cont [12/16] (narrow) %v1999_v29, 32 }
 0x262   : > { %v1952_v25 = vpop.f32.mrf.mxu0 }
 0x263   : > { %v1953_v17 = vadd.f32 %v1952_v25, %v1860_v39 }
 0x265   : > { %v2643_v45 = vpop.eup %2642  ;;  %v1973_v59 = vmax.f32 %v1953_v17, 1e-05 }
 0x266   : > { %v2001_v57 = vmul.f32 0.6931472, %v2643_v45 }
 0x267   : > { %2644 = vlog2.f32 %v1973_v59 }
 0x268   : > { %2020 = vxpose.xlu1.b32.cont [13/16] (narrow) %v2001_v57, 32 }
 0x26a   : > { %v1955_v50 = vpop.f32.mrf.mxu0 }
 0x26b   : > { %v1956_v60 = vadd.f32 %v1955_v50, %v1861_v16 }
 0x26d   : > { %v2645_v41 = vpop.eup %2644  ;;  %v1974_v33 = vmax.f32 %v1956_v60, 1e-05 }
 0x26e   : > { %v2003_v3 = vmul.f32 0.6931472, %v2645_v41 }
 0x26f   : > { %2646 = vlog2.f32 %v1974_v33 }
 0x270   : > { %2021 = vxpose.xlu1.b32.cont [14/16] (narrow) %v2003_v3, 32 }
 0x272   : > { %v1957_v2 = vpop.f32.mrf.mxu0 }
 0x273   : > { %v1958_v35 = vadd.f32 %v1957_v2, %v1862_v62 }
 0x275   : > { %v2647_v26 = vpop.eup %2646  ;;  %v1975_v11 = vmax.f32 %v1958_v35, 1e-05 }
 0x276   : > { %v2005_v20 = vmul.f32 0.6931472, %v2647_v26 }
 0x277   : > { %2648 = vlog2.f32 %v1975_v11 }
 0x278   : > { %2022 = vxpose.xlu1.b32.cont [15/16] (narrow) %v2005_v20, 32 }
 0x27d   : > { %v2649_v6 = vpop.eup %2648 }
 0x27e   : > { %v2007_v24 = vmul.f32 0.6931472, %v2649_v6 }
 0x280   : > { %2023 = vxpose.xlu1.b32.end [16/16] (narrow) %v2007_v24, 32 }
 0x2ac   : > { %v2024_v15 = vpop.trf.xlu1 }
 0x2ad   : > { %2040 = vst [vmem:[%s290_s14] sm:$0xff] %v2024_v15 }
 0x2b4   : > { %v2025_v23 = vpop.trf.xlu1 }
 0x2b5   : > { %2041 = vst [vmem:[%s290_s14 + $0x8] sm:$0xff] %v2025_v23 }
 0x2bc   : > { %v2026_v44 = vpop.trf.xlu1 }
 0x2bd   : > { %2042 = vst [vmem:[%s290_s14 + $0x10] sm:$0xff] %v2026_v44 }
 0x2c4   : > { %v2027_v55 = vpop.trf.xlu1 }
 0x2c5   : > { %2043 = vst [vmem:[%s290_s14 + $0x18] sm:$0xff] %v2027_v55 }
 0x2c6   : > { %2677 = shalt.err (!%p2674_p5)
}
 0x2c7   : > { %s2731_s12 = smov 128   ;;  %s2732_s14 = smov 8  }
 0x2c8   : > { %2491 = dma.vmem_to_hbm [thread:$0]  (%p2803_p4), %s2059_s25, 512, %s2061_s27, %s2045_s7, %s2731_s12, %s2731_s12, %s2732_s14  }
 0x2c9 PF: > { %p2498_p6 = scmp.ge.s32.totalorder %s2728_s23, 2  ;;  %s2075_s15 = sand.u32 1, %s2708_s18  }
 0x2ca   : > { %s2076_s16 = scalar_lea.sflag [#allocation3], %s2075_s15 }
 0x2cb   : > { %p2494_p7 = pnand %p2498_p6, %p2810_p8 }
 0x2cd   : > { %p2495_p9 = pneg %p2494_p7 }
 0x2cf   : > { %2703 = dma.done.wait (%p2495_p9), %s2076_s16, 512  }
 0x2d0   : > { %2705 = vsyncadd (%p2495_p9), %s2076_s16, 4294966784  ;;  %s18_s23 = sadd.s32 1, %s2728_s23   ;;  %s4048_s18 = smov %s2712_s19 }
 0x2d1   : > { %p15_p10 = scmp.ge.s32.totalorder %s18_s23, 4   ;;  %s4049_s19 = smov %s2716_s20 }
 0x2d2   : > { %s4050_s20 = smov %s2816_s6  ;;  %s4051_s21 = smov %s2724_s22 }
 0x2d3   : > { %s4052_s22 = smov %s4054_s26  ;;  %17 = sbr.rel (!%p15_p10) target bundleno = 4 (0x4), region = 78 }
 0x2d8   :  { %2082 = vsyncpa [#allocation3], 1 }
 0x2d9   :  { %2084 = vsyncpa [#allocation3 + $0x1], 1 }

</bundles_post_ra>
